<compile_context>
chip_gen: v7x
topology: tpu7x:2x2x1
jax: 0.10.0
libtpu: 0.0.40
codegen_flags: <defaults>
</compile_context>

<pallas_src>
import functools
import math

import jax
import jax.numpy as jnp
import numpy as np
from jax import lax
from jax.experimental import pallas as pl
from jax.experimental.pallas import tpu as pltpu


# ----------------------------------------------------------------------------
# Fused kernel: one grid step = one batch element.
# ----------------------------------------------------------------------------
def _fused_slide_attention_kernel(
    x_ref,        # (1, N, C)
    wqkv_ref,     # (C, 3C)
    bqkv_ref,     # (1, 3C)
    bias_ref,     # (1, nh, N, N)
    wdw_ref,      # (K*K, N, C)   depthwise weights with boundary mask folded in
    wproj_ref,    # (C, C)
    bproj_ref,    # (1, C)
    o_ref,        # (1, N, C)
    *,
    num_heads,
    head_dim,
    H,
    W,
    K,
    scale,
):
    N = H * W
    C = num_heads * head_dim

    x = x_ref[0]                                                    # (N, C)

    # ---- qkv projection: one MXU matmul for all heads ----
    qkv = jnp.dot(x, wqkv_ref[...], preferred_element_type=jnp.float32)
    qkv = qkv + bqkv_ref[...]                                       # (N, 3C)

    # ---- attention: all heads in this grid step (statically unrolled) ----
    head_outs = []
    for h in range(num_heads):
        lo = h * head_dim
        q = qkv[:, lo:lo + head_dim]                                # (N, hd)
        k = qkv[:, C + lo:C + lo + head_dim]                        # (N, hd)
        v = qkv[:, 2 * C + lo:2 * C + lo + head_dim]                # (N, hd)

        # q @ k^T without materializing a transpose of k (transposed-rhs dot).
        s = lax.dot_general(q, k, (((1,), (1,)), ((), ())),
                            preferred_element_type=jnp.float32)
        s = s * scale + bias_ref[0, h]                              # (N, N)

        m = jnp.max(s, axis=-1, keepdims=True)
        e = jnp.exp(s - m)
        p = e / jnp.sum(e, axis=-1, keepdims=True)
        head_outs.append(jnp.dot(p, v, preferred_element_type=jnp.float32))

    # Lane-dense (N, C) slab with heads concatenated along the lane axis.
    attn_out = jnp.concatenate(head_outs, axis=-1)                  # (N, C)

    # ---- depthwise KxK conv on the HxW image, done on the flattened slab ----
    # Tap (dy, dx) needs attn_out shifted by s_off = (dy-pad)*W + (dx-pad)
    # flattened rows.  Rows that would fall outside the HxW image (including
    # horizontal wrap at the W boundary) already have weight exactly 0 in
    # wdw_ref, so the shift only has to be correct on the in-bounds region.
    pad = K // 2
    acc = jnp.zeros((N, C), jnp.float32)
    for dy in range(K):
        for dx in range(K):
            t = dy * K + dx
            s_off = (dy - pad) * W + (dx - pad)
            if s_off > 0:
                shifted = jnp.concatenate(
                    [attn_out[s_off:, :], jnp.zeros((s_off, C), jnp.float32)],
                    axis=0)
            elif s_off < 0:
                shifted = jnp.concatenate(
                    [jnp.zeros((-s_off, C), jnp.float32),
                     attn_out[:N + s_off, :]],
                    axis=0)
            else:
                shifted = attn_out
            acc = acc + shifted * wdw_ref[t]                        # VPU MAC

    # ---- output projection ----
    out = jnp.dot(acc, wproj_ref[...], preferred_element_type=jnp.float32)
    o_ref[0] = out + bproj_ref[...]


# ----------------------------------------------------------------------------
# Wrapper: builds the static boundary-mask-folded conv weights and launches
# the fused kernel with grid=(B,).
# ----------------------------------------------------------------------------
def slide_attention_forward(x, params, num_heads, kernel_size):
    B, N, C = x.shape
    H = W = int(math.isqrt(N))
    assert H * W == N, "N must be a perfect square"
    head_dim = C // num_heads
    scale = head_dim ** (-0.5)
    K = kernel_size
    pad = K // 2

    # Static boundary mask per conv tap (numpy, trace-time), folded into the
    # depthwise weights so the in-kernel tap loop is one multiply-accumulate.
    mask = np.zeros((K * K, N, 1), np.float32)
    for dy in range(K):
        for dx in range(K):
            oy, ox = dy - pad, dx - pad
            for i in range(H):
                if not (0 <= i + oy < H):
                    continue
                for j in range(W):
                    if 0 <= j + ox < W:
                        mask[dy * K + dx, i * W + j, 0] = 1.0
    w_dw_eff = jnp.asarray(mask) * params["w_dw"].reshape(K * K, 1, C)  # (K*K, N, C)

    kern = functools.partial(
        _fused_slide_attention_kernel,
        num_heads=num_heads, head_dim=head_dim, H=H, W=W, K=K, scale=scale)

    return pl.pallas_call(
        kern,
        out_shape=jax.ShapeDtypeStruct((B, N, C), jnp.float32),
        grid=(B,),
        in_specs=[
            pl.BlockSpec((1, N, C), lambda b: (b, 0, 0)),
            pl.BlockSpec((C, 3 * C), lambda b: (0, 0)),
            pl.BlockSpec((1, 3 * C), lambda b: (0, 0)),
            pl.BlockSpec((1, num_heads, N, N), lambda b: (0, 0, 0, 0)),
            pl.BlockSpec((K * K, N, C), lambda b: (0, 0, 0)),
            pl.BlockSpec((C, C), lambda b: (0, 0)),
            pl.BlockSpec((1, C), lambda b: (0, 0)),
        ],
        out_specs=pl.BlockSpec((1, N, C), lambda b: (b, 0, 0)),
        compiler_params=pltpu.CompilerParams(
            dimension_semantics=("parallel",),
        ),
    )(
        x,
        params["w_qkv"],
        params["b_qkv"].reshape(1, 3 * C),
        params["rel_pos_bias"],
        w_dw_eff,
        params["w_proj"],
        params["b_proj"].reshape(1, C),
    )


# ----------------------------------------------------------------------------
# Pure-JAX reference (for sanity check)
# ----------------------------------------------------------------------------
def reference_forward(x, params, num_heads, kernel_size):
    B, N, C = x.shape
    H = W = int(math.isqrt(N))
    head_dim = C // num_heads
    scale = head_dim ** (-0.5)

    qkv = x @ params["w_qkv"] + params["b_qkv"]
    qkv = qkv.reshape(B, N, 3, num_heads, head_dim).transpose(2, 0, 3, 1, 4)
    q, k, v = qkv[0], qkv[1], qkv[2]
    attn = jnp.einsum("bhnd,bhmd->bhnm", q, k) * scale + params["rel_pos_bias"]
    attn = jax.nn.softmax(attn, axis=-1)
    out = jnp.einsum("bhnm,bhmd->bhnd", attn, v)
    out = out.transpose(0, 2, 1, 3).reshape(B, H, W, C)

    pad = kernel_size // 2
    xp = jnp.pad(out, ((0, 0), (pad, pad), (pad, pad), (0, 0)))
    acc = jnp.zeros_like(out)
    for dy in range(kernel_size):
        for dx in range(kernel_size):
            acc = acc + xp[:, dy:dy + H, dx:dx + W, :] * params["w_dw"][dy, dx, :]
    out = acc.reshape(B, N, C)
    return out @ params["w_proj"] + params["b_proj"]


# ----------------------------------------------------------------------------
if __name__ == "__main__":
    B, C, num_heads, kernel_size = 2, 32, 4, 3
    H = W = 8
    N = H * W

    key = jax.random.PRNGKey(0)
    keys = jax.random.split(key, 8)

    x = jax.random.normal(keys[0], (B, N, C), dtype=jnp.float32)

    params = {
        # nn.Linear(dim, 3*dim): stored already transposed as (C, 3C)
        "w_qkv": jax.random.normal(keys[1], (C, 3 * C), jnp.float32) * 0.05,
        "b_qkv": jax.random.normal(keys[2], (3 * C,), jnp.float32) * 0.02,
        # nn.Linear(dim, dim): (C, C)
        "w_proj": jax.random.normal(keys[3], (C, C), jnp.float32) * 0.05,
        "b_proj": jax.random.normal(keys[4], (C,), jnp.float32) * 0.02,
        # depthwise Conv2d(C, C, k, groups=C, bias=False): PyTorch (C,1,k,k) -> (k,k,C)
        "w_dw": jax.random.normal(keys[5], (kernel_size, kernel_size, C), jnp.float32)
        * 0.1,
        # relative_position_bias_table: trunc_normal(std=0.02), shape (1, nh, N, N)
        "rel_pos_bias": jax.random.truncated_normal(
            keys[6], -2.0, 2.0, (1, num_heads, N, N), jnp.float32
        )
        * 0.02,
    }

    out = slide_attention_forward(x, params, num_heads, kernel_size)
    out = jax.block_until_ready(out)

    ref = jax.block_until_ready(reference_forward(x, params, num_heads, kernel_size))
    np.testing.assert_allclose(np.asarray(out), np.asarray(ref), atol=1e-4, rtol=1e-4)

    assert out.shape == (B, N, C)
    print("KERNEL_OK")
</pallas_src>

<mosaic_0001>
module attributes {stable_mosaic.version = 11 : i64} {
  func.func @_fused_slide_attention_kernel(%arg0: i32, %arg1: memref<1x64x32xf32, #tpu.memory_space<vmem>>, %arg2: memref<32x96xf32, #tpu.memory_space<vmem>>, %arg3: memref<1x96xf32, #tpu.memory_space<vmem>>, %arg4: memref<1x4x64x64xf32, #tpu.memory_space<vmem>>, %arg5: memref<9x64x32xf32, #tpu.memory_space<vmem>>, %arg6: memref<32x32xf32, #tpu.memory_space<vmem>>, %arg7: memref<1x32xf32, #tpu.memory_space<vmem>>, %arg8: memref<1x64x32xf32, #tpu.memory_space<vmem>>) attributes {dimension_semantics = [#tpu.dimension_semantics<parallel>], iteration_bounds = array<i64: 2>, scalar_prefetch = 0 : i64, scratch_operands = 0 : i64, tpu.core_type = #tpu.core_type<tc>, window_params = [{transform_indices = @transform_0, window_bounds = array<i64: 1, 64, 32>}, {pipeline_mode = #tpu.pipeline_mode<synchronous>, transform_indices = @transform_1, window_bounds = array<i64: 32, 96>}, {pipeline_mode = #tpu.pipeline_mode<synchronous>, transform_indices = @transform_2, window_bounds = array<i64: 1, 96>}, {pipeline_mode = #tpu.pipeline_mode<synchronous>, transform_indices = @transform_3, window_bounds = array<i64: 1, 4, 64, 64>}, {pipeline_mode = #tpu.pipeline_mode<synchronous>, transform_indices = @transform_4, window_bounds = array<i64: 9, 64, 32>}, {pipeline_mode = #tpu.pipeline_mode<synchronous>, transform_indices = @transform_5, window_bounds = array<i64: 32, 32>}, {pipeline_mode = #tpu.pipeline_mode<synchronous>, transform_indices = @transform_6, window_bounds = array<i64: 1, 32>}, {transform_indices = @transform_7, window_bounds = array<i64: 1, 64, 32>}]} {
    %c0 = arith.constant 0 : index
    %c0_0 = arith.constant 0 : index
    %c0_1 = arith.constant 0 : index
    %0 = vector.load %arg1[%c0, %c0_0, %c0_1] : memref<1x64x32xf32, #tpu.memory_space<vmem>>, vector<1x64x32xf32>
    %1 = vector.shape_cast %0 : vector<1x64x32xf32> to vector<64x32xf32>
    %c0_2 = arith.constant 0 : index
    %c0_3 = arith.constant 0 : index
    %2 = vector.load %arg2[%c0_2, %c0_3] : memref<32x96xf32, #tpu.memory_space<vmem>>, vector<32x96xf32>
    %cst = arith.constant dense<0.000000e+00> : vector<64x96xf32>
    %3 = tpu.matmul %1, %2, %cst {dimension_numbers = #tpu.dot_dimension_numbers<[1], [0], [0], [1], [0, 0, 1, 1], [], []>} : vector<64x32xf32>, vector<32x96xf32>, vector<64x96xf32> -> vector<64x96xf32>
    %c0_4 = arith.constant 0 : index
    %c0_5 = arith.constant 0 : index
    %4 = vector.load %arg3[%c0_4, %c0_5] : memref<1x96xf32, #tpu.memory_space<vmem>>, vector<1x96xf32>
    %5 = vector.broadcast %4 : vector<1x96xf32> to vector<64x96xf32>
    %6 = arith.addf %3, %5 : vector<64x96xf32>
    %7 = vector.extract_strided_slice %6 {offsets = [0, 0], sizes = [64, 8], strides = [1, 1]} : vector<64x96xf32> to vector<64x8xf32>
    %8 = vector.extract_strided_slice %6 {offsets = [0, 32], sizes = [64, 8], strides = [1, 1]} : vector<64x96xf32> to vector<64x8xf32>
    %9 = vector.extract_strided_slice %6 {offsets = [0, 64], sizes = [64, 8], strides = [1, 1]} : vector<64x96xf32> to vector<64x8xf32>
    %cst_6 = arith.constant dense<0.000000e+00> : vector<64x64xf32>
    %10 = tpu.matmul %7, %8, %cst_6 {dimension_numbers = #tpu.dot_dimension_numbers<[1], [1], [0], [0], [0, 0, 1, 0], [], []>} : vector<64x8xf32>, vector<64x8xf32>, vector<64x64xf32> -> vector<64x64xf32>
    %cst_7 = arith.constant 0.353553385 : f32
    %11 = vector.broadcast %cst_7 : f32 to vector<64x64xf32>
    %12 = arith.mulf %10, %11 : vector<64x64xf32>
    %c0_8 = arith.constant 0 : index
    %c0_9 = arith.constant 0 : index
    %c0_10 = arith.constant 0 : index
    %c0_11 = arith.constant 0 : index
    %13 = vector.load %arg4[%c0_8, %c0_9, %c0_10, %c0_11] : memref<1x4x64x64xf32, #tpu.memory_space<vmem>>, vector<1x1x64x64xf32>
    %14 = vector.shape_cast %13 : vector<1x1x64x64xf32> to vector<64x64xf32>
    %15 = arith.addf %12, %14 : vector<64x64xf32>
    %cst_12 = arith.constant dense<0xFF800000> : vector<64xf32>
    %16 = vector.multi_reduction <maximumf>, %15, %cst_12 [1] : vector<64x64xf32> to vector<64xf32>
    %17 = vector.shape_cast %16 : vector<64xf32> to vector<64x1xf32>
    %18 = vector.broadcast %17 : vector<64x1xf32> to vector<64x64xf32>
    %19 = arith.subf %15, %18 : vector<64x64xf32>
    %20 = math.exp %19 : vector<64x64xf32>
    %cst_13 = arith.constant dense<0.000000e+00> : vector<64xf32>
    %21 = vector.multi_reduction <add>, %20, %cst_13 [1] : vector<64x64xf32> to vector<64xf32>
    %22 = vector.shape_cast %21 : vector<64xf32> to vector<64x1xf32>
    %23 = vector.broadcast %22 : vector<64x1xf32> to vector<64x64xf32>
    %24 = arith.divf %20, %23 : vector<64x64xf32>
    %cst_14 = arith.constant dense<0.000000e+00> : vector<64x8xf32>
    %25 = tpu.matmul %24, %9, %cst_14 {dimension_numbers = #tpu.dot_dimension_numbers<[1], [0], [0], [1], [0, 0, 1, 1], [], []>} : vector<64x64xf32>, vector<64x8xf32>, vector<64x8xf32> -> vector<64x8xf32>
    %26 = vector.extract_strided_slice %6 {offsets = [0, 8], sizes = [64, 8], strides = [1, 1]} : vector<64x96xf32> to vector<64x8xf32>
    %27 = vector.extract_strided_slice %6 {offsets = [0, 40], sizes = [64, 8], strides = [1, 1]} : vector<64x96xf32> to vector<64x8xf32>
    %28 = vector.extract_strided_slice %6 {offsets = [0, 72], sizes = [64, 8], strides = [1, 1]} : vector<64x96xf32> to vector<64x8xf32>
    %cst_15 = arith.constant dense<0.000000e+00> : vector<64x64xf32>
    %29 = tpu.matmul %26, %27, %cst_15 {dimension_numbers = #tpu.dot_dimension_numbers<[1], [1], [0], [0], [0, 0, 1, 0], [], []>} : vector<64x8xf32>, vector<64x8xf32>, vector<64x64xf32> -> vector<64x64xf32>
    %cst_16 = arith.constant 0.353553385 : f32
    %30 = vector.broadcast %cst_16 : f32 to vector<64x64xf32>
    %31 = arith.mulf %29, %30 : vector<64x64xf32>
    %c0_17 = arith.constant 0 : index
    %c1 = arith.constant 1 : index
    %c0_18 = arith.constant 0 : index
    %c0_19 = arith.constant 0 : index
    %32 = vector.load %arg4[%c0_17, %c1, %c0_18, %c0_19] : memref<1x4x64x64xf32, #tpu.memory_space<vmem>>, vector<1x1x64x64xf32>
    %33 = vector.shape_cast %32 : vector<1x1x64x64xf32> to vector<64x64xf32>
    %34 = arith.addf %31, %33 : vector<64x64xf32>
    %cst_20 = arith.constant dense<0xFF800000> : vector<64xf32>
    %35 = vector.multi_reduction <maximumf>, %34, %cst_20 [1] : vector<64x64xf32> to vector<64xf32>
    %36 = vector.shape_cast %35 : vector<64xf32> to vector<64x1xf32>
    %37 = vector.broadcast %36 : vector<64x1xf32> to vector<64x64xf32>
    %38 = arith.subf %34, %37 : vector<64x64xf32>
    %39 = math.exp %38 : vector<64x64xf32>
    %cst_21 = arith.constant dense<0.000000e+00> : vector<64xf32>
    %40 = vector.multi_reduction <add>, %39, %cst_21 [1] : vector<64x64xf32> to vector<64xf32>
    %41 = vector.shape_cast %40 : vector<64xf32> to vector<64x1xf32>
    %42 = vector.broadcast %41 : vector<64x1xf32> to vector<64x64xf32>
    %43 = arith.divf %39, %42 : vector<64x64xf32>
    %cst_22 = arith.constant dense<0.000000e+00> : vector<64x8xf32>
    %44 = tpu.matmul %43, %28, %cst_22 {dimension_numbers = #tpu.dot_dimension_numbers<[1], [0], [0], [1], [0, 0, 1, 1], [], []>} : vector<64x64xf32>, vector<64x8xf32>, vector<64x8xf32> -> vector<64x8xf32>
    %45 = vector.extract_strided_slice %6 {offsets = [0, 16], sizes = [64, 8], strides = [1, 1]} : vector<64x96xf32> to vector<64x8xf32>
    %46 = vector.extract_strided_slice %6 {offsets = [0, 48], sizes = [64, 8], strides = [1, 1]} : vector<64x96xf32> to vector<64x8xf32>
    %47 = vector.extract_strided_slice %6 {offsets = [0, 80], sizes = [64, 8], strides = [1, 1]} : vector<64x96xf32> to vector<64x8xf32>
    %cst_23 = arith.constant dense<0.000000e+00> : vector<64x64xf32>
    %48 = tpu.matmul %45, %46, %cst_23 {dimension_numbers = #tpu.dot_dimension_numbers<[1], [1], [0], [0], [0, 0, 1, 0], [], []>} : vector<64x8xf32>, vector<64x8xf32>, vector<64x64xf32> -> vector<64x64xf32>
    %cst_24 = arith.constant 0.353553385 : f32
    %49 = vector.broadcast %cst_24 : f32 to vector<64x64xf32>
    %50 = arith.mulf %48, %49 : vector<64x64xf32>
    %c0_25 = arith.constant 0 : index
    %c2 = arith.constant 2 : index
    %c0_26 = arith.constant 0 : index
    %c0_27 = arith.constant 0 : index
    %51 = vector.load %arg4[%c0_25, %c2, %c0_26, %c0_27] : memref<1x4x64x64xf32, #tpu.memory_space<vmem>>, vector<1x1x64x64xf32>
    %52 = vector.shape_cast %51 : vector<1x1x64x64xf32> to vector<64x64xf32>
    %53 = arith.addf %50, %52 : vector<64x64xf32>
    %cst_28 = arith.constant dense<0xFF800000> : vector<64xf32>
    %54 = vector.multi_reduction <maximumf>, %53, %cst_28 [1] : vector<64x64xf32> to vector<64xf32>
    %55 = vector.shape_cast %54 : vector<64xf32> to vector<64x1xf32>
    %56 = vector.broadcast %55 : vector<64x1xf32> to vector<64x64xf32>
    %57 = arith.subf %53, %56 : vector<64x64xf32>
    %58 = math.exp %57 : vector<64x64xf32>
    %cst_29 = arith.constant dense<0.000000e+00> : vector<64xf32>
    %59 = vector.multi_reduction <add>, %58, %cst_29 [1] : vector<64x64xf32> to vector<64xf32>
    %60 = vector.shape_cast %59 : vector<64xf32> to vector<64x1xf32>
    %61 = vector.broadcast %60 : vector<64x1xf32> to vector<64x64xf32>
    %62 = arith.divf %58, %61 : vector<64x64xf32>
    %cst_30 = arith.constant dense<0.000000e+00> : vector<64x8xf32>
    %63 = tpu.matmul %62, %47, %cst_30 {dimension_numbers = #tpu.dot_dimension_numbers<[1], [0], [0], [1], [0, 0, 1, 1], [], []>} : vector<64x64xf32>, vector<64x8xf32>, vector<64x8xf32> -> vector<64x8xf32>
    %64 = vector.extract_strided_slice %6 {offsets = [0, 24], sizes = [64, 8], strides = [1, 1]} : vector<64x96xf32> to vector<64x8xf32>
    %65 = vector.extract_strided_slice %6 {offsets = [0, 56], sizes = [64, 8], strides = [1, 1]} : vector<64x96xf32> to vector<64x8xf32>
    %66 = vector.extract_strided_slice %6 {offsets = [0, 88], sizes = [64, 8], strides = [1, 1]} : vector<64x96xf32> to vector<64x8xf32>
    %cst_31 = arith.constant dense<0.000000e+00> : vector<64x64xf32>
    %67 = tpu.matmul %64, %65, %cst_31 {dimension_numbers = #tpu.dot_dimension_numbers<[1], [1], [0], [0], [0, 0, 1, 0], [], []>} : vector<64x8xf32>, vector<64x8xf32>, vector<64x64xf32> -> vector<64x64xf32>
    %cst_32 = arith.constant 0.353553385 : f32
    %68 = vector.broadcast %cst_32 : f32 to vector<64x64xf32>
    %69 = arith.mulf %67, %68 : vector<64x64xf32>
    %c0_33 = arith.constant 0 : index
    %c3 = arith.constant 3 : index
    %c0_34 = arith.constant 0 : index
    %c0_35 = arith.constant 0 : index
    %70 = vector.load %arg4[%c0_33, %c3, %c0_34, %c0_35] : memref<1x4x64x64xf32, #tpu.memory_space<vmem>>, vector<1x1x64x64xf32>
    %71 = vector.shape_cast %70 : vector<1x1x64x64xf32> to vector<64x64xf32>
    %72 = arith.addf %69, %71 : vector<64x64xf32>
    %cst_36 = arith.constant dense<0xFF800000> : vector<64xf32>
    %73 = vector.multi_reduction <maximumf>, %72, %cst_36 [1] : vector<64x64xf32> to vector<64xf32>
    %74 = vector.shape_cast %73 : vector<64xf32> to vector<64x1xf32>
    %75 = vector.broadcast %74 : vector<64x1xf32> to vector<64x64xf32>
    %76 = arith.subf %72, %75 : vector<64x64xf32>
    %77 = math.exp %76 : vector<64x64xf32>
    %cst_37 = arith.constant dense<0.000000e+00> : vector<64xf32>
    %78 = vector.multi_reduction <add>, %77, %cst_37 [1] : vector<64x64xf32> to vector<64xf32>
    %79 = vector.shape_cast %78 : vector<64xf32> to vector<64x1xf32>
    %80 = vector.broadcast %79 : vector<64x1xf32> to vector<64x64xf32>
    %81 = arith.divf %77, %80 : vector<64x64xf32>
    %cst_38 = arith.constant dense<0.000000e+00> : vector<64x8xf32>
    %82 = tpu.matmul %81, %66, %cst_38 {dimension_numbers = #tpu.dot_dimension_numbers<[1], [0], [0], [1], [0, 0, 1, 1], [], []>} : vector<64x64xf32>, vector<64x8xf32>, vector<64x8xf32> -> vector<64x8xf32>
    %83 = tpu.concatenate %25, %44, %63, %82 in 1 : vector<64x8xf32>, vector<64x8xf32>, vector<64x8xf32>, vector<64x8xf32> -> vector<64x32xf32>
    %cst_39 = arith.constant 0.000000e+00 : f32
    %84 = vector.broadcast %cst_39 : f32 to vector<64x32xf32>
    %cst_40 = arith.constant 0.000000e+00 : f32
    %85 = vector.broadcast %cst_40 : f32 to vector<9x32xf32>
    %86 = vector.extract_strided_slice %83 {offsets = [0, 0], sizes = [55, 32], strides = [1, 1]} : vector<64x32xf32> to vector<55x32xf32>
    %87 = tpu.concatenate %85, %86 in 0 : vector<9x32xf32>, vector<55x32xf32> -> vector<64x32xf32>
    %c0_41 = arith.constant 0 : index
    %c0_42 = arith.constant 0 : index
    %c0_43 = arith.constant 0 : index
    %88 = vector.load %arg5[%c0_41, %c0_42, %c0_43] : memref<9x64x32xf32, #tpu.memory_space<vmem>>, vector<1x64x32xf32>
    %89 = vector.shape_cast %88 : vector<1x64x32xf32> to vector<64x32xf32>
    %90 = arith.mulf %87, %89 : vector<64x32xf32>
    %91 = arith.addf %84, %90 : vector<64x32xf32>
    %cst_44 = arith.constant 0.000000e+00 : f32
    %92 = vector.broadcast %cst_44 : f32 to vector<8x32xf32>
    %93 = vector.extract_strided_slice %83 {offsets = [0, 0], sizes = [56, 32], strides = [1, 1]} : vector<64x32xf32> to vector<56x32xf32>
    %94 = tpu.concatenate %92, %93 in 0 : vector<8x32xf32>, vector<56x32xf32> -> vector<64x32xf32>
    %c1_45 = arith.constant 1 : index
    %c0_46 = arith.constant 0 : index
    %c0_47 = arith.constant 0 : index
    %95 = vector.load %arg5[%c1_45, %c0_46, %c0_47] : memref<9x64x32xf32, #tpu.memory_space<vmem>>, vector<1x64x32xf32>
    %96 = vector.shape_cast %95 : vector<1x64x32xf32> to vector<64x32xf32>
    %97 = arith.mulf %94, %96 : vector<64x32xf32>
    %98 = arith.addf %91, %97 : vector<64x32xf32>
    %cst_48 = arith.constant 0.000000e+00 : f32
    %99 = vector.broadcast %cst_48 : f32 to vector<7x32xf32>
    %100 = vector.extract_strided_slice %83 {offsets = [0, 0], sizes = [57, 32], strides = [1, 1]} : vector<64x32xf32> to vector<57x32xf32>
    %101 = tpu.concatenate %99, %100 in 0 : vector<7x32xf32>, vector<57x32xf32> -> vector<64x32xf32>
    %c2_49 = arith.constant 2 : index
    %c0_50 = arith.constant 0 : index
    %c0_51 = arith.constant 0 : index
    %102 = vector.load %arg5[%c2_49, %c0_50, %c0_51] : memref<9x64x32xf32, #tpu.memory_space<vmem>>, vector<1x64x32xf32>
    %103 = vector.shape_cast %102 : vector<1x64x32xf32> to vector<64x32xf32>
    %104 = arith.mulf %101, %103 : vector<64x32xf32>
    %105 = arith.addf %98, %104 : vector<64x32xf32>
    %cst_52 = arith.constant 0.000000e+00 : f32
    %106 = vector.broadcast %cst_52 : f32 to vector<1x32xf32>
    %107 = vector.extract_strided_slice %83 {offsets = [0, 0], sizes = [63, 32], strides = [1, 1]} : vector<64x32xf32> to vector<63x32xf32>
    %108 = tpu.concatenate %106, %107 in 0 : vector<1x32xf32>, vector<63x32xf32> -> vector<64x32xf32>
    %c3_53 = arith.constant 3 : index
    %c0_54 = arith.constant 0 : index
    %c0_55 = arith.constant 0 : index
    %109 = vector.load %arg5[%c3_53, %c0_54, %c0_55] : memref<9x64x32xf32, #tpu.memory_space<vmem>>, vector<1x64x32xf32>
    %110 = vector.shape_cast %109 : vector<1x64x32xf32> to vector<64x32xf32>
    %111 = arith.mulf %108, %110 : vector<64x32xf32>
    %112 = arith.addf %105, %111 : vector<64x32xf32>
    %c4 = arith.constant 4 : index
    %c0_56 = arith.constant 0 : index
    %c0_57 = arith.constant 0 : index
    %113 = vector.load %arg5[%c4, %c0_56, %c0_57] : memref<9x64x32xf32, #tpu.memory_space<vmem>>, vector<1x64x32xf32>
    %114 = vector.shape_cast %113 : vector<1x64x32xf32> to vector<64x32xf32>
    %115 = arith.mulf %83, %114 : vector<64x32xf32>
    %116 = arith.addf %112, %115 : vector<64x32xf32>
    %117 = vector.extract_strided_slice %83 {offsets = [1, 0], sizes = [63, 32], strides = [1, 1]} : vector<64x32xf32> to vector<63x32xf32>
    %cst_58 = arith.constant 0.000000e+00 : f32
    %118 = vector.broadcast %cst_58 : f32 to vector<1x32xf32>
    %119 = tpu.concatenate %117, %118 in 0 : vector<63x32xf32>, vector<1x32xf32> -> vector<64x32xf32>
    %c5 = arith.constant 5 : index
    %c0_59 = arith.constant 0 : index
    %c0_60 = arith.constant 0 : index
    %120 = vector.load %arg5[%c5, %c0_59, %c0_60] : memref<9x64x32xf32, #tpu.memory_space<vmem>>, vector<1x64x32xf32>
    %121 = vector.shape_cast %120 : vector<1x64x32xf32> to vector<64x32xf32>
    %122 = arith.mulf %119, %121 : vector<64x32xf32>
    %123 = arith.addf %116, %122 : vector<64x32xf32>
    %124 = vector.extract_strided_slice %83 {offsets = [7, 0], sizes = [57, 32], strides = [1, 1]} : vector<64x32xf32> to vector<57x32xf32>
    %cst_61 = arith.constant 0.000000e+00 : f32
    %125 = vector.broadcast %cst_61 : f32 to vector<7x32xf32>
    %126 = tpu.concatenate %124, %125 in 0 : vector<57x32xf32>, vector<7x32xf32> -> vector<64x32xf32>
    %c6 = arith.constant 6 : index
    %c0_62 = arith.constant 0 : index
    %c0_63 = arith.constant 0 : index
    %127 = vector.load %arg5[%c6, %c0_62, %c0_63] : memref<9x64x32xf32, #tpu.memory_space<vmem>>, vector<1x64x32xf32>
    %128 = vector.shape_cast %127 : vector<1x64x32xf32> to vector<64x32xf32>
    %129 = arith.mulf %126, %128 : vector<64x32xf32>
    %130 = arith.addf %123, %129 : vector<64x32xf32>
    %131 = vector.extract_strided_slice %83 {offsets = [8, 0], sizes = [56, 32], strides = [1, 1]} : vector<64x32xf32> to vector<56x32xf32>
    %cst_64 = arith.constant 0.000000e+00 : f32
    %132 = vector.broadcast %cst_64 : f32 to vector<8x32xf32>
    %133 = tpu.concatenate %131, %132 in 0 : vector<56x32xf32>, vector<8x32xf32> -> vector<64x32xf32>
    %c7 = arith.constant 7 : index
    %c0_65 = arith.constant 0 : index
    %c0_66 = arith.constant 0 : index
    %134 = vector.load %arg5[%c7, %c0_65, %c0_66] : memref<9x64x32xf32, #tpu.memory_space<vmem>>, vector<1x64x32xf32>
    %135 = vector.shape_cast %134 : vector<1x64x32xf32> to vector<64x32xf32>
    %136 = arith.mulf %133, %135 : vector<64x32xf32>
    %137 = arith.addf %130, %136 : vector<64x32xf32>
    %138 = vector.extract_strided_slice %83 {offsets = [9, 0], sizes = [55, 32], strides = [1, 1]} : vector<64x32xf32> to vector<55x32xf32>
    %cst_67 = arith.constant 0.000000e+00 : f32
    %139 = vector.broadcast %cst_67 : f32 to vector<9x32xf32>
    %140 = tpu.concatenate %138, %139 in 0 : vector<55x32xf32>, vector<9x32xf32> -> vector<64x32xf32>
    %c8 = arith.constant 8 : index
    %c0_68 = arith.constant 0 : index
    %c0_69 = arith.constant 0 : index
    %141 = vector.load %arg5[%c8, %c0_68, %c0_69] : memref<9x64x32xf32, #tpu.memory_space<vmem>>, vector<1x64x32xf32>
    %142 = vector.shape_cast %141 : vector<1x64x32xf32> to vector<64x32xf32>
    %143 = arith.mulf %140, %142 : vector<64x32xf32>
    %144 = arith.addf %137, %143 : vector<64x32xf32>
    %c0_70 = arith.constant 0 : index
    %c0_71 = arith.constant 0 : index
    %145 = vector.load %arg6[%c0_70, %c0_71] : memref<32x32xf32, #tpu.memory_space<vmem>>, vector<32x32xf32>
    %cst_72 = arith.constant dense<0.000000e+00> : vector<64x32xf32>
    %146 = tpu.matmul %144, %145, %cst_72 {dimension_numbers = #tpu.dot_dimension_numbers<[1], [0], [0], [1], [0, 0, 1, 1], [], []>} : vector<64x32xf32>, vector<32x32xf32>, vector<64x32xf32> -> vector<64x32xf32>
    %c0_73 = arith.constant 0 : index
    %c0_74 = arith.constant 0 : index
    %147 = vector.load %arg7[%c0_73, %c0_74] : memref<1x32xf32, #tpu.memory_space<vmem>>, vector<1x32xf32>
    %148 = vector.broadcast %147 : vector<1x32xf32> to vector<64x32xf32>
    %149 = arith.addf %146, %148 : vector<64x32xf32>
    %c0_75 = arith.constant 0 : index
    %c0_76 = arith.constant 0 : index
    %c0_77 = arith.constant 0 : index
    %150 = vector.load %arg8[%c0_75, %c0_76, %c0_77] : memref<1x64x32xf32, #tpu.memory_space<vmem>>, vector<1x64x32xf32>
    %151 = vector.shape_cast %150 : vector<1x64x32xf32> to vector<64x32xf32>
    %152 = vector.shape_cast %149 : vector<64x32xf32> to vector<1x64x32xf32>
    tpu.vector_store %arg8[%c0_75, %c0_76, %c0_77], %152 {strides = array<i32>} : memref<1x64x32xf32, #tpu.memory_space<vmem>>, vector<1x64x32xf32>,
    return
  }
  func.func @transform_0(%arg0: i32) -> (i32, i32, i32) {
    %c0_i32 = arith.constant 0 : i32
    %c0_i32_0 = arith.constant 0 : i32
    %c0_i32_1 = arith.constant 0 : i32
    return %arg0, %c0_i32, %c0_i32_0 : i32, i32, i32
  }
  func.func @transform_1(%arg0: i32) -> (i32, i32) {
    %c0_i32 = arith.constant 0 : i32
    %c0_i32_0 = arith.constant 0 : i32
    %c0_i32_1 = arith.constant 0 : i32
    return %c0_i32, %c0_i32_0 : i32, i32
  }
  func.func @transform_2(%arg0: i32) -> (i32, i32) {
    %c0_i32 = arith.constant 0 : i32
    %c0_i32_0 = arith.constant 0 : i32
    %c0_i32_1 = arith.constant 0 : i32
    return %c0_i32, %c0_i32_0 : i32, i32
  }
  func.func @transform_3(%arg0: i32) -> (i32, i32, i32, i32) {
    %c0_i32 = arith.constant 0 : i32
    %c0_i32_0 = arith.constant 0 : i32
    %c0_i32_1 = arith.constant 0 : i32
    %c0_i32_2 = arith.constant 0 : i32
    %c0_i32_3 = arith.constant 0 : i32
    return %c0_i32, %c0_i32_0, %c0_i32_1, %c0_i32_2 : i32, i32, i32, i32
  }
  func.func @transform_4(%arg0: i32) -> (i32, i32, i32) {
    %c0_i32 = arith.constant 0 : i32
    %c0_i32_0 = arith.constant 0 : i32
    %c0_i32_1 = arith.constant 0 : i32
    %c0_i32_2 = arith.constant 0 : i32
    return %c0_i32, %c0_i32_0, %c0_i32_1 : i32, i32, i32
  }
  func.func @transform_5(%arg0: i32) -> (i32, i32) {
    %c0_i32 = arith.constant 0 : i32
    %c0_i32_0 = arith.constant 0 : i32
    %c0_i32_1 = arith.constant 0 : i32
    return %c0_i32, %c0_i32_0 : i32, i32
  }
  func.func @transform_6(%arg0: i32) -> (i32, i32) {
    %c0_i32 = arith.constant 0 : i32
    %c0_i32_0 = arith.constant 0 : i32
    %c0_i32_1 = arith.constant 0 : i32
    return %c0_i32, %c0_i32_0 : i32, i32
  }
  func.func @transform_7(%arg0: i32) -> (i32, i32, i32) {
    %c0_i32 = arith.constant 0 : i32
    %c0_i32_0 = arith.constant 0 : i32
    %c0_i32_1 = arith.constant 0 : i32
    return %arg0, %c0_i32, %c0_i32_0 : i32, i32, i32
  }
}

</mosaic_0001>

<bundles_post_ra>
// kernel: tpu_custom_call.1
= control target key start
LH: loop header
LB: loop body
LE: loop exit
PB: predicated region body
PF: predicated region fallthrough
CT: control target
= control target key end

     0   :  { %s3959_s24 = smov 0   ;;  %s5082_s0 = inlined_call_operand.vmem [shape: f32[2,64,32], index: 0, kind: input, shape index: {}]   ;;  %s5083_s1 = inlined_call_operand.vmem [shape: f32[32,96], index: 1, kind: input, shape index: {}]   ;;  %s5084_s2 = inlined_call_operand.vmem [shape: f32[1,96], index: 2, kind: input, shape index: {}]   ;;  %s5085_s3 = inlined_call_operand.vmem [shape: f32[1,4,64,64], index: 3, kind: input, shape index: {}]   ;;  %s5086_s4 = inlined_call_operand.vmem [shape: f32[9,64,32], index: 4, kind: input, shape index: {}]   ;;  %s5087_s5 = inlined_call_operand.vmem [shape: f32[32,32], index: 5, kind: input, shape index: {}]   ;;  %s5088_s6 = inlined_call_operand.vmem [shape: f32[1,32], index: 6, kind: input, shape index: {}]   ;;  %s5089_s7 = inlined_call_operand.vmem [shape: f32[2,64,32], index: 7, kind: output, shape index: {}]  }
   0x1 LB: > { %s2772_s25 = sadd.s32 4294967295, %s3903_s24   ;;  %p2776_p0 = scmp.ge.s32.totalorder %s3903_s24, 1  ;;  %s3903_s24 = sphi %s3959_s24, %s17_s24  }
   0x2   : > { %p237_p1 = scmp.lt.s32.totalorder %s3903_s24, 3 }
   0x4   : > { %p238_p2 = pnand %p2776_p0, %p237_p1 }
   0x5   : > { %v287_v0 = vld [vmem:[%s5083_s1] sm:$0xff] (!%p238_p2)  ;;  %v288_v1 = vld [vmem:[%s5083_s1 + $0x8] sm:$0xff] (!%p238_p2)  ;;  %v289_v2 = vld [vmem:[%s5083_s1 + $0x10] sm:$0xff] (!%p238_p2)  ;;  %p269_p3 = scmp.lt.s32.totalorder (!%p238_p2), %s2772_s25, 1  ;;  %vm298_vm0 = vcmask (!%p238_p2), 261120   ;;  %vm452_vm1 = vcmask (!%p238_p2), 64512  }
   0x6   : > { %241 = sbr.rel (%p238_p2) target bundleno = 3507 (0xdb3), region = 48  ;;  %v3403_v3 = vpack.c.bf16 (!%p238_p2), %v288_v1, %v287_v0  ;;  %v290_v4 = vld [vmem:[%s5083_s1 + $0x18] sm:$0xff] (!%p238_p2)  ;;  %v2781_v14 = vld [vmem:[%s5084_s2] ss:$0 sm:$0xff] (!%p238_p2)  ;;  %s3905_s17 = smov (!%p238_p2), 96   ;;  %vm4038_vm2 = vmpackc.low (!%p238_p2), %vm452_vm1, %vm452_vm1  ;;  %vm614_vm3 = vcmask (!%p238_p2), 523264  }
   0x7   : > { %v3407_v5 = vpack.c.bf16 (!%p238_p2), %v290_v4, %v289_v2  ;;  %v599_v53 = vld [vmem:[%s5085_s3 + $0x8] sm:$0xff] (!%p238_p2)  ;;  %v598_v56 = vld [vmem:[%s5085_s3] sm:$0xff] (!%p238_p2)  ;;  %v601_v61 = vld [vmem:[%s5085_s3 + $0x18] sm:$0xff] (!%p238_p2)  ;;  %s3906_s9 = smov (!%p238_p2), 64   ;;  %s3907_s15 = smov (!%p238_p2), 88   ;;  %vm2265_vm4 = vcmask (!%p238_p2), 130048  }
   0x8   : > { %3404 = vmatprep.subr.bf16.mxu0 (!%p238_p2), %v3403_v3  ;;  %v600_v4 = vld [vmem:[%s5085_s3 + $0x10] sm:$0xff] (!%p238_p2)  ;;  %s3908_s16 = smov (!%p238_p2), 120   ;;  %s3909_s8 = smov (!%p238_p2), 56   ;;  %vm2274_vm5 = vcmask (!%p238_p2), 195584   ;;  %vm2290_vm6 = vcmask (!%p238_p2), 1040384   ;;  %vm2362_vm7 = vcmask (!%p238_p2), 1046528  }
   0x9   : > { %3406 = vmatpush3.bf16.msra.mxu0 (!%p238_p2), %v3403_v3  ;;  %s3912_s30 = smov (!%p238_p2), 48   ;;  %s3913_s13 = smov (!%p238_p2), 72  }
   0xa   : > { %3408 = vmatprep.subr.bf16.mxu0 (!%p238_p2), %v3407_v5  ;;  %s3915_s10 = smov (!%p238_p2), 40   ;;  %s3916_s12 = smov (!%p238_p2), 8  }
   0xd   : > { %s5093_s25 = smov (!%p269_p3, %s2772_s25), 1  ;;  %3410 = vmatpush3.bf16.msra.mxu0 %v3407_v5 }
   0xe   : > { %s2985_s11 = sshll.u32 %s5093_s25, 6 }
   0xf   : > { %s273_s14 = scalar_lea.vmem %s5082_s0, %s2985_s11 }
  0x10   : > { %v279_v6 = vld [vmem:[%s273_s14] sm:$0xff]  ;;  %v280_v7 = vld [vmem:[%s273_s14 + $0x8] sm:$0xff]  ;;  %v281_v8 = vld [vmem:[%s273_s14 + $0x10] sm:$0xff] }
  0x11   : > { %3147 = vmatprep.mubr.msk.f32.mxu0 %vm298_vm0, %v279_v6  ;;  %v282_v9 = vld [vmem:[%s273_s14 + $0x18] sm:$0xff]  ;;  %v283_v10 = vld [vmem:[%s273_s14 + $0x20] sm:$0xff]  ;;  %v284_v11 = vld [vmem:[%s273_s14 + $0x28] sm:$0xff] }
  0x12   : > { %3148 = vmatmul.mubr.msk.f32.vlgmr.msra.gmra.mrb[0].mxu0 %vm298_vm0, %v280_v7  ;;  %v285_v12 = vld [vmem:[%s273_s14 + $0x30] sm:$0xff]  ;;  %v286_v13 = vld [vmem:[%s273_s14 + $0x38] sm:$0xff]  ;;  %s3910_s14 = smov 80  }
  0x13   : > { %3150 = vmatprep.mubr.msk.f32.mxu0 %vm298_vm0, %v281_v8 }
  0x16   : > { %3151 = vmatmul.mubr.msk.f32.gmra.mrb[2].mxu0 %vm298_vm0, %v282_v9 }
  0x17   : > { %3153 = vmatprep.mubr.msk.f32.mxu0 %vm298_vm0, %v283_v10  ;;  %v603_v10 = vld [vmem:[%s5085_s3 + $0x28] sm:$0xff] }
  0x1a   : > { %3154 = vmatmul.mubr.msk.f32.gmra.mrb[4].mxu0 %vm298_vm0, %v284_v11 }
  0x1b   : > { %3156 = vmatprep.mubr.msk.f32.mxu0 %vm298_vm0, %v285_v12 }
  0x1e   : > { %3157 = vmatmul.mubr.msk.f32.gmra.mrb[6].mxu0 %vm298_vm0, %v286_v13 }
  0xe5   : > { %v3149_v15 = vpop.f32.mrb[0].mxu0 }
  0xe6   : > { %v3998_v16 = vadd.f32 %v3149_v15, %v2781_v14  ;;  %v389_v17 = vpop.f32.mrb[1].mxu0 }
  0xe7   : > { %v4000_v18 = vadd.f32 %v2781_v14, %v389_v17  ;;  %v605_v17 = vld [vmem:[%s5085_s3 + $0x38] sm:$0xff] }
  0xe9   : > { %3175 = vmatprep.mubr.msk.f32.mxu1 %vm452_vm1, %v4000_v18  ;;  %v4006_v19 = vpack.i.bf16 %v3998_v16, %v4000_v18  ;;  %v3152_v20 = vpop.f32.mrb[2].mxu0 }
  0xea   : > { %v4008_v21 = vadd.f32 %v3152_v20, %v2781_v14  ;;  %v399_v22 = vpop.f32.mrb[3].mxu0 }
  0xeb   : > { %3610 = vrot.lane.b32.xlu0 %v4006_v19, %s3905_s17  ;;  %v4011_v23 = vadd.f32 %v2781_v14, %v399_v22 }
  0xed   : > { %v4015_v24 = vpack.i.bf16 %v4008_v21, %v4011_v23  ;;  %v3155_v25 = vpop.f32.mrb[4].mxu0 }
  0xee   : > { %v4017_v26 = vadd.f32 %v3155_v25, %v2781_v14  ;;  %v409_v27 = vpop.f32.mrb[5].mxu0 }
  0xef   : > { %3615 = vrot.lane.b32.xlu0 %v4015_v24, %s3905_s17  ;;  %v4020_v28 = vadd.f32 %v2781_v14, %v409_v27 }
  0xf1   : > { %v4024_v29 = vpack.i.bf16 %v4017_v26, %v4020_v28  ;;  %v3158_v30 = vpop.f32.mrb[6].mxu0 }
  0xf2   : > { %v4026_v31 = vadd.f32 %v3158_v30, %v2781_v14  ;;  %v419_v32 = vpop.f32.mrb[7].mxu0  ;;  %v602_v30 = vld [vmem:[%s5085_s3 + $0x20] sm:$0xff] }
  0xf3   : > { %3620 = vrot.lane.b32.xlu1 %v4024_v29, %s3905_s17  ;;  %v4029_v33 = vadd.f32 %v2781_v14, %v419_v32 }
  0xf5   : > { %v4033_v34 = vpack.i.bf16 %v4026_v31, %v4029_v33 }
  0xf7   : > { %3625 = vrot.lane.b32.xlu1 %v4033_v34, %s3905_s17 }
 0x15d   : > { %v3611_v35 = vpop.permute.xlu0 %3610 }
 0x15e   : > { %v3613_v36 = vunpack.i.h.bf16 %v3611_v35  ;;  %v3612_v37 = vunpack.i.l.bf16 %v3611_v35 }
 0x160   : > { %v3411_v39 = vpack.c.bf16 %v3613_v36, %v3612_v37  ;;  %v604_v37 = vld [vmem:[%s5085_s3 + $0x30] sm:$0xff] }
 0x161   : > { %v3616_v40 = vpop.permute.xlu0 %3615 }
 0x162   : > { %3413 = vmatprep.subr.msk.bf16.mxu1 %vm4038_vm2, %v3411_v39  ;;  %v3618_v41 = vunpack.i.h.bf16 %v3616_v40  ;;  %v3617_v42 = vunpack.i.l.bf16 %v3616_v40 }
 0x163   : > { %3416 = vmatpush3.bf16.xpose.msk.msra.mxu1 %vm4038_vm2, %v3411_v39 }
 0x164   : > { %v3417_v43 = vpack.c.bf16 %v3618_v41, %v3617_v42 }
 0x165   : > { %v3621_v44 = vpop.permute.xlu1 %3620 }
 0x166   : > { %3419 = vmatprep.subr.msk.bf16.mxu1 %vm4038_vm2, %v3417_v43  ;;  %v3623_v45 = vunpack.i.h.bf16 %v3621_v44  ;;  %v3622_v46 = vunpack.i.l.bf16 %v3621_v44 }
 0x168   : > { %v3423_v47 = vpack.c.bf16 %v3623_v45, %v3622_v46 }
 0x169   : > { %v3626_v48 = vpop.permute.xlu1 %3625 }
 0x16a   : > { %v3628_v49 = vunpack.i.h.bf16 %v3626_v48  ;;  %v3627_v50 = vunpack.i.l.bf16 %v3626_v48 }
 0x16b   : > { %3422 = vmatpush3.bf16.xpose.msk.msra.mxu1 %vm4038_vm2, %v3417_v43 }
 0x16c   : > { %3425 = vmatprep.subr.msk.bf16.mxu1 %vm4038_vm2, %v3423_v47  ;;  %v3429_v51 = vpack.c.bf16 %v3628_v49, %v3627_v50 }
 0x173   : > { %3428 = vmatpush3.bf16.xpose.msk.msra.mxu1 %vm4038_vm2, %v3423_v47 }
 0x174   : > { %3431 = vmatprep.subr.msk.bf16.mxu1 %vm4038_vm2, %v3429_v51 }
 0x17b   : > { %3434 = vmatpush3.bf16.xpose.msk.msra.mxu1 %vm4038_vm2, %v3429_v51 }
 0x182   : > { %3176 = vmatmul.mubr.msk.f32.vlgmr.msra.gmra.mrb[0].mxu1 %vm452_vm1, %v3998_v16 }
 0x183   : > { %3178 = vmatprep.mubr.msk.f32.mxu1 %vm452_vm1, %v4011_v23 }
 0x186   : > { %3179 = vmatmul.mubr.msk.f32.gmra.mrb[2].mxu1 %vm452_vm1, %v4008_v21 }
 0x187   : > { %3181 = vmatprep.mubr.msk.f32.mxu1 %vm452_vm1, %v4020_v28 }
 0x18a   : > { %3182 = vmatmul.mubr.msk.f32.gmra.mrb[4].mxu1 %vm452_vm1, %v4017_v26 }
 0x18b   : > { %3184 = vmatprep.mubr.msk.f32.mxu1 %vm452_vm1, %v4029_v33 }
 0x18e   : > { %3185 = vmatmul.mubr.msk.f32.gmra.mrb[6].mxu1 %vm452_vm1, %v4026_v31 }
 0x255   : > { %v3177_v52 = vpop.f32.mrb[0].mxu1 }
 0x256   : > { %v591_v54 = vmul.f32 0.35355338, %v3177_v52  ;;  %v551_v55 = vpop.f32.mrb[1].mxu1 }
 0x257   : > { %v590_v57 = vmul.f32 0.35355338, %v551_v55 }
 0x258   : > { %v607_v58 = vadd.f32 %v599_v53, %v591_v54 }
 0x259   : > { %v3180_v59 = vpop.f32.mrb[2].mxu1  ;;  %v606_v60 = vadd.f32 %v598_v56, %v590_v57 }
 0x25a   : > { %v593_v62 = vmul.f32 0.35355338, %v3180_v59  ;;  %v561_v63 = vpop.f32.mrb[3].mxu1  ;;  %v618_v0 = vsel %vm614_vm3, %v607_v58, -inf }
 0x25b   : > { %v592_v1 = vmul.f32 0.35355338, %v561_v63  ;;  %619 = vmax.xlane.f32.xlu1 %v618_v0  ;;  %v615_v2 = vsel %vm614_vm3, %v606_v60, -inf }
 0x25c   : > { %616 = vmax.xlane.f32.xlu0 %v615_v2  ;;  %v4083_v3 = vadd.f32 %v601_v61, %v593_v62 }
 0x25d   : > { %v3183_v5 = vpop.f32.mrb[4].mxu1  ;;  %v608_v9 = vadd.f32 %v600_v4, %v592_v1 }
 0x25e   : > { %v571_v6 = vpop.f32.mrb[5].mxu1  ;;  %v624_v7 = vsel %vm614_vm3, %v4083_v3, -inf  ;;  %v595_v8 = vmul.f32 0.35355338, %v3183_v5 }
 0x25f   : > { %v621_v14 = vsel %vm614_vm3, %v608_v9, -inf  ;;  %v594_v27 = vmul.f32 0.35355338, %v571_v6 }
 0x260   : > { %625 = vmax.xlane.f32.xlu0 %v624_v7  ;;  %v611_v15 = vadd.f32 %v603_v10, %v595_v8 }
 0x261   : > { %v3186_v11 = vpop.f32.mrb[6].mxu1  ;;  %v610_v32 = vadd.f32 %v602_v30, %v594_v27 }
 0x262   : > { %v581_v12 = vpop.f32.mrb[7].mxu1  ;;  %v597_v13 = vmul.f32 0.35355338, %v3186_v11  ;;  %v630_v20 = vsel %vm614_vm3, %v611_v15, -inf }
 0x263   : > { %v627_v35 = vsel %vm614_vm3, %v610_v32, -inf  ;;  %v596_v36 = vmul.f32 0.35355338, %v581_v12 }
 0x264   : > { %622 = vmax.xlane.f32.xlu0 %v621_v14  ;;  %v4098_v22 = vadd.f32 %v605_v17, %v597_v13 }
 0x265   : > { %v4112_v39 = vadd.f32 %v604_v37, %v596_v36 }
 0x266   : > { %v636_v25 = vsel %vm614_vm3, %v4098_v22, -inf }
 0x267   : > { %v633_v40 = vsel %vm614_vm3, %v4112_v39, -inf }
 0x268   : > { %631 = vmax.xlane.f32.xlu0 %v630_v20 }
 0x26c   : > { %3630 = vrot.lane.b32.xlu1 %v4006_v19, %s3906_s9  ;;  %637 = vmax.xlane.f32.xlu0 %v636_v25 }
 0x282   : > { %3635 = vrot.lane.b32.xlu0 %v4015_v24, %s3906_s9 }
 0x290   : > { %628 = vmax.xlane.f32.xlu1 %v627_v35 }
 0x2a1   : > { %3640 = vrot.lane.b32.xlu1 %v4024_v29, %s3906_s9 }
 0x2c5   : > { %634 = vmax.xlane.f32.xlu1 %v633_v40 }
 0x2d6   : > { %3645 = vrot.lane.b32.xlu1 %v4033_v34, %s3906_s9 }
 0x2e8   : > { %v620_v41 = vpop.xlane.xlu1 %619 }
 0x2e9   : > { %v640_v42 = vsub.f32 %v607_v58, %v620_v41  ;;  %v617_v43 = vpop.xlane.xlu0 %616 }
 0x2ea   : > { %v639_v44 = vsub.f32 %v606_v60, %v617_v43 }
 0x2eb   : > { %v649_v45 = vmul.f32 1.442695, %v640_v42 }
 0x2ec   : > { %v647_v46 = vmul.f32 1.442695, %v639_v44  ;;  %v3631_v47 = vpop.permute.xlu1 %3630 }
 0x2ed   : > { %3769 = vpow2.f32 %v649_v45  ;;  %v3633_v48 = vunpack.i.h.bf16 %v3631_v47  ;;  %v3632_v49 = vunpack.i.l.bf16 %v3631_v47  ;;  %v626_v50 = vpop.xlane.xlu0 %625 }
 0x2ee   : > { %3771 = vpow2.f32 %v647_v46  ;;  %v642_v8 = vsub.f32 %v4083_v3, %v626_v50 }
 0x2ef   : > { %v3435_v51 = vpack.c.bf16 %v3633_v48, %v3632_v49 }
 0x2f0   : > { %v653_v10 = vmul.f32 1.442695, %v642_v8 }
 0x2f1   : > { %3436 = vmatprep.subr.bf16.mxu0 %v3435_v51  ;;  %v623_v52 = vpop.xlane.xlu0 %622 }
 0x2f2   : > { %v641_v53 = vsub.f32 %v608_v9, %v623_v52  ;;  %3438 = vmatpush3.bf16.msra.mxu0 %v3435_v51 }
 0x2f4   : > { %v651_v54 = vmul.f32 1.442695, %v641_v53 }
 0x2f5   : > { %v632_v55 = vpop.xlane.xlu0 %631 }
 0x2f6   : > { %3773 = vpow2.f32 %v651_v54  ;;  %v644_v56 = vsub.f32 %v611_v15, %v632_v55 }
 0x2f7   : > { %v4117_v57 = vpop.eup %3769 }
 0x2f8   : > { %v4119_v58 = vpop.eup %3771  ;;  %v657_v59 = vmul.f32 1.442695, %v644_v56  ;;  %v666_v60 = vsel %vm614_vm3, %v4117_v57, 0.0 }
 0x2f9   : > { %667 = vadd.xlane.f32.xlu0 %v666_v60  ;;  %v638_v61 = vpop.xlane.xlu0 %637  ;;  %v663_v62 = vsel %vm614_vm3, %v4119_v58, 0.0 }
 0x2fa   : > { %3775 = vpow2.f32 %v657_v59  ;;  %664 = vadd.xlane.f32.xlu1 %v663_v62  ;;  %v646_v9 = vsub.f32 %v4098_v22, %v638_v61 }
 0x2fb   : > { %3777 = vpow2.f32 %v653_v10 }
 0x2fc   : > { %v661_v13 = vmul.f32 1.442695, %v646_v9 }
 0x2fd   : > { %v3636_v63 = vpop.permute.xlu0 %3635 }
 0x2fe   : > { %v3638_v0 = vunpack.i.h.bf16 %v3636_v63  ;;  %v3637_v1 = vunpack.i.l.bf16 %v3636_v63 }
 0x300   : > { %v4125_v2 = vpop.eup %3773  ;;  %v3439_v4 = vpack.c.bf16 %v3638_v0, %v3637_v1 }
 0x301   : > { %v669_v5 = vsel %vm614_vm3, %v4125_v2, 0.0 }
 0x302   : > { %670 = vadd.xlane.f32.xlu0 %v669_v5  ;;  %3440 = vmatprep.subr.bf16.mxu0 %v3439_v4 }
 0x303   : > { %3442 = vmatpush3.bf16.msra.mxu0 %v3439_v4 }
 0x304   : > { %v4129_v6 = vpop.eup %3775 }
 0x305   : > { %v678_v7 = vsel %vm614_vm3, %v4129_v6, 0.0  ;;  %v4137_v27 = vpop.eup %3777 }
 0x306   : > { %679 = vadd.xlane.f32.xlu0 %v678_v7 }
 0x30b   : > { %3650 = vrot.lane.b32.xlu1 %v4006_v19, %s3907_s15 }
 0x31d   : > { %v629_v11 = vpop.xlane.xlu1 %628 }
 0x31e   : > { %v643_v12 = vsub.f32 %v610_v32, %v629_v11  ;;  %v672_v32 = vsel %vm614_vm3, %v4137_v27, 0.0 }
 0x320   : > { %v655_v14 = vmul.f32 1.442695, %v643_v12 }
 0x321   : > { %v3641_v15 = vpop.permute.xlu1 %3640 }
 0x322   : > { %3779 = vpow2.f32 %v655_v14  ;;  %v3643_v17 = vunpack.i.h.bf16 %v3641_v15  ;;  %v3642_v20 = vunpack.i.l.bf16 %v3641_v15 }
 0x323   : > { %3781 = vpow2.f32 %v661_v13 }
 0x324   : > { %v3443_v25 = vpack.c.bf16 %v3643_v17, %v3642_v20 }
 0x326   : > { %3444 = vmatprep.subr.bf16.mxu0 %v3443_v25 }
 0x327   : > { %3446 = vmatpush3.bf16.msra.mxu0 %v3443_v25 }
 0x32c   : > { %v4139_v30 = vpop.eup %3779 }
 0x32d   : > { %v675_v3 = vsel %vm614_vm3, %v4139_v30, 0.0  ;;  %v4143_v22 = vpop.eup %3781 }
 0x32e   : > { %676 = vadd.xlane.f32.xlu0 %v675_v3  ;;  %v684_v35 = vsel %vm614_vm3, %v4143_v22, 0.0 }
 0x32f   : > { %673 = vadd.xlane.f32.xlu1 %v672_v32 }
 0x332   : > { %685 = vadd.xlane.f32.xlu0 %v684_v35 }
 0x340   : > { %3660 = vrot.lane.b32.xlu1 %v4024_v29, %s3907_s15 }
 0x344   : > { %3665 = vrot.lane.b32.xlu1 %v4033_v34, %s3907_s15 }
 0x348   : > { %856 = vrot.lane.b32.xlu1 %v4000_v18, %s3908_s16 }
 0x34c   : > { %858 = vrot.lane.b32.xlu1 %v3998_v16, %s3908_s16 }
 0x350   : > { %862 = vrot.lane.b32.xlu1 %v4008_v21, %s3908_s16 }
 0x352   : > { %v635_v36 = vpop.xlane.xlu1 %634 }
 0x353   : > { %v645_v37 = vsub.f32 %v4112_v39, %v635_v36 }
 0x354   : > { %866 = vrot.lane.b32.xlu1 %v4017_v26, %s3908_s16 }
 0x355   : > { %v659_v40 = vmul.f32 1.442695, %v645_v37 }
 0x356   : > { %v3646_v41 = vpop.permute.xlu1 %3645 }
 0x357   : > { %3783 = vpow2.f32 %v659_v40  ;;  %v3648_v42 = vunpack.i.h.bf16 %v3646_v41  ;;  %v3647_v43 = vunpack.i.l.bf16 %v3646_v41 }
 0x358   : > { %870 = vrot.lane.b32.xlu1 %v4026_v31, %s3908_s16 }
 0x359   : > { %v3447_v44 = vpack.c.bf16 %v3648_v42, %v3647_v43 }
 0x35b   : > { %3448 = vmatprep.subr.bf16.mxu0 %v3447_v44 }
 0x35c   : > { %3450 = vmatpush3.bf16.msra.mxu0 %v3447_v44 }
 0x361   : > { %v3784_v45 = vpop.eup %3783 }
 0x362   : > { %v681_v46 = vsel %vm614_vm3, %v3784_v45, 0.0 }
 0x363   : > { %682 = vadd.xlane.f32.xlu0 %v681_v46 }
 0x379   : > { %3655 = vrot.lane.b32.xlu0 %v4015_v24, %s3907_s15  ;;  %s3911_s15 = smov 112  }
 0x37d   : > { %860 = vrot.lane.b32.xlu0 %v4011_v23, %s3908_s16 }
 0x381   : > { %864 = vrot.lane.b32.xlu0 %v4020_v28, %s3908_s16 }
 0x385   : > { %868 = vrot.lane.b32.xlu0 %v4029_v33, %s3908_s16 }
 0x386   : > { %v668_v39 = vpop.xlane.xlu0 %667 }
 0x387   : > { %3785 = vrcp.f32 %v668_v39  ;;  %v665_v47 = vpop.xlane.xlu1 %664 }
 0x388   : > { %3787 = vrcp.f32 %v665_v47 }
 0x38b   : > { %v3651_v48 = vpop.permute.xlu1 %3650 }
 0x38c   : > { %v3653_v49 = vunpack.i.h.bf16 %v3651_v48  ;;  %v3652_v50 = vunpack.i.l.bf16 %v3651_v48 }
 0x38e   : > { %v3451_v51 = vpack.c.bf16 %v3653_v49, %v3652_v50 }
 0x38f   : > { %v671_v52 = vpop.xlane.xlu0 %670 }
 0x390   : > { %3789 = vrcp.f32 %v671_v52  ;;  %3453 = vmatprep.subr.msk.bf16.mxu0 %vm4038_vm2, %v3451_v51  ;;  %v2831_v52 = vld [vmem:[%s5085_s3 + $0x48] sm:$0xff] }
 0x391   : > { %v3786_v53 = vpop.eup %3785 }
 0x392   : > { %v3788_v54 = vpop.eup %3787  ;;  %v690_v56 = vmul.f32 %v3786_v53, %v4117_v57 }
 0x393   : > { %v688_v55 = vmul.f32 %v3788_v54, %v4119_v58  ;;  %v680_v61 = vpop.xlane.xlu0 %679 }
 0x395   : > { %3203 = vmatprep.mubr.msk.f32.mxu0 %vm614_vm3, %v688_v55  ;;  %v2830_v55 = vld [vmem:[%s5085_s3 + $0x40] sm:$0xff] }
 0x396   : > { %3204 = vmatmul.mubr.msk.f32.vlgmr.msra.gmra.mrb[8].mxu0 %vm614_vm3, %v690_v56 }
 0x397   : > { %3456 = vmatpush3.bf16.xpose.msk.msra.mxu0 %vm4038_vm2, %v3451_v51 }
 0x39a   : > { %v3790_v59 = vpop.eup %3789 }
 0x39b   : > { %v692_v60 = vmul.f32 %v3790_v59, %v4125_v2 }
 0x39d   : > { %3206 = vmatprep.mubr.msk.f32.mxu0 %vm614_vm3, %v692_v60 }
 0x3bb   : > { %v677_v62 = vpop.xlane.xlu0 %676 }
 0x3bc   : > { %3791 = vrcp.f32 %v677_v62  ;;  %v674_v63 = vpop.xlane.xlu1 %673  ;;  %v2833_v62 = vld [vmem:[%s5085_s3 + $0x58] sm:$0xff] }
 0x3bd   : > { %3793 = vrcp.f32 %v674_v63 }
 0x3be   : > { %3795 = vrcp.f32 %v680_v61 }
 0x3bf   : > { %v686_v5 = vpop.xlane.xlu0 %685 }
 0x3c0   : > { %3797 = vrcp.f32 %v686_v5  ;;  %v3661_v8 = vpop.permute.xlu1 %3660 }
 0x3c1   : > { %v3663_v10 = vunpack.i.h.bf16 %v3661_v8  ;;  %v3662_v11 = vunpack.i.l.bf16 %v3661_v8 }
 0x3c3   : > { %v3463_v15 = vpack.c.bf16 %v3663_v10, %v3662_v11  ;;  %v2835_v11 = vld [vmem:[%s5085_s3 + $0x68] sm:$0xff] }
 0x3c4   : > { %v3666_v17 = vpop.permute.xlu1 %3665 }
 0x3c6   : > { %v3792_v58 = vpop.eup %3791 }
 0x3c7   : > { %v3794_v57 = vpop.eup %3793  ;;  %v696_v4 = vmul.f32 %v3792_v58, %v4139_v30  ;;  %v3667_v30 = vunpack.i.l.bf16 %v3666_v17 }
 0x3c8   : > { %v694_v0 = vmul.f32 %v3794_v57, %v4137_v27  ;;  %v3796_v1 = vpop.eup %3795  ;;  %v3668_v27 = vunpack.i.h.bf16 %v3666_v17  ;;  %v857_v32 = vpop.permute.xlu1 %856 }
 0x3c9   : > { %v698_v2 = vmul.f32 %v3796_v1, %v4129_v6 }
 0x3ca   : > { %3207 = vmatmul.mubr.msk.f32.gmra.mrb[10].mxu0 %vm614_vm3, %v694_v0  ;;  %v3798_v20 = vpop.eup %3797  ;;  %v3469_v35 = vpack.c.bf16 %v3668_v27, %v3667_v30 }
 0x3cb   : > { %3209 = vmatprep.mubr.msk.f32.mxu0 %vm614_vm3, %v696_v4  ;;  %v702_v3 = vmul.f32 %v3798_v20, %v4143_v22  ;;  %v2837_v20 = vld [vmem:[%s5085_s3 + $0x78] sm:$0xff] }
 0x3cc   : > { %v859_v36 = vpop.permute.xlu1 %858 }
 0x3ce   : > { %3210 = vmatmul.mubr.msk.f32.gmra.mrb[12].mxu0 %vm614_vm3, %v698_v2  ;;  %v2832_v2 = vld [vmem:[%s5085_s3 + $0x50] sm:$0xff] }
 0x3d0   : > { %v863_v22 = vpop.permute.xlu1 %862 }
 0x3d4   : > { %v867_v41 = vpop.permute.xlu1 %866 }
 0x3d8   : > { %v871_v43 = vpop.permute.xlu1 %870 }
 0x3f0   : > { %v683_v7 = vpop.xlane.xlu0 %682 }
 0x3f1   : > { %3799 = vrcp.f32 %v683_v7 }
 0x3f4   : > { %v3656_v9 = vpop.permute.xlu0 %3655 }
 0x3f5   : > { %v3658_v12 = vunpack.i.h.bf16 %v3656_v9  ;;  %v3657_v13 = vunpack.i.l.bf16 %v3656_v9 }
 0x3f7   : > { %v3457_v14 = vpack.c.bf16 %v3658_v12, %v3657_v13 }
 0x3f8   : > { %v861_v37 = vpop.permute.xlu0 %860 }
 0x3f9   : > { %3459 = vmatprep.subr.msk.bf16.mxu0 %vm4038_vm2, %v3457_v14 }
 0x3fa   : > { %3462 = vmatpush3.bf16.xpose.msk.msra.mxu0 %vm4038_vm2, %v3457_v14 }
 0x3fb   : > { %v3800_v6 = vpop.eup %3799  ;;  %3465 = vmatprep.subr.msk.bf16.mxu0 %vm4038_vm2, %v3463_v15 }
 0x3fc   : > { %v700_v25 = vmul.f32 %v3800_v6, %v3784_v45  ;;  %v865_v40 = vpop.permute.xlu0 %864 }
 0x3fe   : > { %3212 = vmatprep.mubr.msk.f32.mxu0 %vm614_vm3, %v700_v25 }
 0x3ff   : > { %3213 = vmatmul.mubr.msk.f32.gmra.mrb[14].mxu0 %vm614_vm3, %v702_v3  ;;  %v2834_v3 = vld [vmem:[%s5085_s3 + $0x60] sm:$0xff] }
 0x400   : > { %3231 = vmatprep.mubr.msk.f32.mxu0 %vm452_vm1, %v857_v32  ;;  %v869_v42 = vpop.permute.xlu0 %868 }
 0x402   : > { %3468 = vmatpush3.bf16.xpose.msk.msra.mxu0 %vm4038_vm2, %v3463_v15 }
 0x403   : > { %3471 = vmatprep.subr.msk.bf16.mxu0 %vm4038_vm2, %v3469_v35 }
 0x40a   : > { %3474 = vmatpush3.bf16.xpose.msk.msra.mxu0 %vm4038_vm2, %v3469_v35 }
 0x411   : > { %3232 = vmatmul.mubr.msk.f32.vlgmr.msra.gmra.mrb[16].mxu0 %vm452_vm1, %v859_v36 }
 0x412   : > { %3234 = vmatprep.mubr.msk.f32.mxu0 %vm452_vm1, %v861_v37  ;;  %v2836_v37 = vld [vmem:[%s5085_s3 + $0x70] sm:$0xff] }
 0x415   : > { %3235 = vmatmul.mubr.msk.f32.gmra.mrb[18].mxu0 %vm452_vm1, %v863_v22 }
 0x416   : > { %3237 = vmatprep.mubr.msk.f32.mxu0 %vm452_vm1, %v865_v40 }
 0x419   : > { %3238 = vmatmul.mubr.msk.f32.gmra.mrb[20].mxu0 %vm452_vm1, %v867_v41 }
 0x41a   : > { %3240 = vmatprep.mubr.msk.f32.mxu0 %vm452_vm1, %v869_v42 }
 0x41d   : > { %3241 = vmatmul.mubr.msk.f32.gmra.mrb[22].mxu0 %vm452_vm1, %v871_v43 }
 0x469   : > { %v4204_v44 = vpop.f32.mrb[8].mxu0 }
 0x46a   : > { %v4206_v45 = vpop.f32.mrb[9].mxu0 }
 0x49d   : > { %v4208_v46 = vpop.f32.mrb[10].mxu0 }
 0x49e   : > { %v4210_v39 = vpop.f32.mrb[11].mxu0 }
 0x4a1   : > { %v4212_v47 = vpop.f32.mrb[12].mxu0 }
 0x4a2   : > { %v4214_v48 = vpop.f32.mrb[13].mxu0 }
 0x4d2   : > { %v4216_v49 = vpop.f32.mrb[14].mxu0 }
 0x4d3   : > { %v4218_v50 = vpop.f32.mrb[15].mxu0 }
 0x4e4   : > { %v3233_v51 = vpop.f32.mrb[16].mxu0 }
 0x4e5   : > { %v1026_v53 = vmul.f32 0.35355338, %v3233_v51  ;;  %v986_v54 = vpop.f32.mrb[17].mxu0 }
 0x4e6   : > { %v1025_v56 = vmul.f32 0.35355338, %v986_v54 }
 0x4e7   : > { %v1043_v59 = vadd.f32 %v2831_v52, %v1026_v53 }
 0x4e8   : > { %v3236_v60 = vpop.f32.mrb[18].mxu0  ;;  %v1042_v61 = vadd.f32 %v2830_v55, %v1025_v56 }
 0x4e9   : > { %v1028_v63 = vmul.f32 0.35355338, %v3236_v60  ;;  %v996_v58 = vpop.f32.mrb[19].mxu0  ;;  %v1053_v57 = vsel %vm614_vm3, %v1043_v59, -inf }
 0x4ea   : > { %v1027_v0 = vmul.f32 0.35355338, %v996_v58  ;;  %1054 = vmax.xlane.f32.xlu1 %v1053_v57  ;;  %v1050_v1 = vsel %vm614_vm3, %v1042_v61, -inf }
 0x4eb   : > { %1051 = vmax.xlane.f32.xlu0 %v1050_v1  ;;  %v4231_v4 = vadd.f32 %v2833_v62, %v1028_v63 }
 0x4ec   : > { %v3239_v5 = vpop.f32.mrb[20].mxu0  ;;  %v1044_v10 = vadd.f32 %v2832_v2, %v1027_v0 }
 0x4ed   : > { %v1006_v7 = vpop.f32.mrb[21].mxu0  ;;  %v1059_v8 = vsel %vm614_vm3, %v4231_v4, -inf  ;;  %v1030_v9 = vmul.f32 0.35355338, %v3239_v5 }
 0x4ee   : > { %v1056_v15 = vsel %vm614_vm3, %v1044_v10, -inf  ;;  %v1029_v30 = vmul.f32 0.35355338, %v1006_v7 }
 0x4ef   : > { %1060 = vmax.xlane.f32.xlu0 %v1059_v8  ;;  %v1047_v17 = vadd.f32 %v2835_v11, %v1030_v9 }
 0x4f0   : > { %v3242_v12 = vpop.f32.mrb[22].mxu0  ;;  %v1046_v32 = vadd.f32 %v2834_v3, %v1029_v30 }
 0x4f1   : > { %v1016_v13 = vpop.f32.mrb[23].mxu0  ;;  %v1032_v14 = vmul.f32 0.35355338, %v3242_v12  ;;  %v1065_v6 = vsel %vm614_vm3, %v1047_v17, -inf }
 0x4f2   : > { %v1062_v35 = vsel %vm614_vm3, %v1046_v32, -inf  ;;  %v1031_v36 = vmul.f32 0.35355338, %v1016_v13 }
 0x4f3   : > { %1057 = vmax.xlane.f32.xlu0 %v1056_v15  ;;  %v4246_v25 = vadd.f32 %v2837_v20, %v1032_v14 }
 0x4f4   : > { %v4260_v22 = vadd.f32 %v2836_v37, %v1031_v36 }
 0x4f5   : > { %v1071_v27 = vsel %vm614_vm3, %v4246_v25, -inf }
 0x4f6   : > { %v1068_v40 = vsel %vm614_vm3, %v4260_v22, -inf }
 0x4f7   : > { %1066 = vmax.xlane.f32.xlu0 %v1065_v6 }
 0x4fb   : > { %3670 = vrot.lane.b32.xlu1 %v4006_v19, %s3909_s8  ;;  %1072 = vmax.xlane.f32.xlu0 %v1071_v27 }
 0x511   : > { %3675 = vrot.lane.b32.xlu0 %v4015_v24, %s3909_s8 }
 0x51f   : > { %1063 = vmax.xlane.f32.xlu1 %v1062_v35 }
 0x530   : > { %3680 = vrot.lane.b32.xlu1 %v4024_v29, %s3909_s8 }
 0x554   : > { %1069 = vmax.xlane.f32.xlu1 %v1068_v40 }
 0x565   : > { %3685 = vrot.lane.b32.xlu1 %v4033_v34, %s3909_s8 }
 0x577   : > { %v1055_v41 = vpop.xlane.xlu1 %1054 }
 0x578   : > { %v1075_v42 = vsub.f32 %v1043_v59, %v1055_v41  ;;  %v1052_v43 = vpop.xlane.xlu0 %1051 }
 0x579   : > { %v1074_v51 = vsub.f32 %v1042_v61, %v1052_v43 }
 0x57a   : > { %v1084_v52 = vmul.f32 1.442695, %v1075_v42 }
 0x57b   : > { %v1082_v53 = vmul.f32 1.442695, %v1074_v51  ;;  %v3671_v54 = vpop.permute.xlu1 %3670 }
 0x57c   : > { %3801 = vpow2.f32 %v1084_v52  ;;  %v3673_v55 = vunpack.i.h.bf16 %v3671_v54  ;;  %v3672_v56 = vunpack.i.l.bf16 %v3671_v54  ;;  %v1061_v60 = vpop.xlane.xlu0 %1060 }
 0x57d   : > { %3803 = vpow2.f32 %v1082_v53  ;;  %v1077_v20 = vsub.f32 %v4231_v4, %v1061_v60 }
 0x57e   : > { %v3475_v62 = vpack.c.bf16 %v3673_v55, %v3672_v56 }
 0x57f   : > { %v1088_v27 = vmul.f32 1.442695, %v1077_v20 }
 0x580   : > { %3476 = vmatprep.subr.bf16.mxu1 %v3475_v62  ;;  %v1058_v63 = vpop.xlane.xlu0 %1057 }
 0x581   : > { %v1076_v58 = vsub.f32 %v1044_v10, %v1058_v63  ;;  %3478 = vmatpush3.bf16.msra.mxu1 %v3475_v62 }
 0x583   : > { %v1086_v57 = vmul.f32 1.442695, %v1076_v58 }
 0x584   : > { %v1067_v0 = vpop.xlane.xlu0 %1066 }
 0x585   : > { %3805 = vpow2.f32 %v1086_v57  ;;  %v1079_v1 = vsub.f32 %v1047_v17, %v1067_v0 }
 0x586   : > { %v4265_v59 = vpop.eup %3801 }
 0x587   : > { %v4267_v61 = vpop.eup %3803  ;;  %v1092_v2 = vmul.f32 1.442695, %v1079_v1  ;;  %v1101_v5 = vsel %vm614_vm3, %v4265_v59, 0.0 }
 0x588   : > { %1102 = vadd.xlane.f32.xlu0 %v1101_v5  ;;  %v1073_v7 = vpop.xlane.xlu0 %1072  ;;  %v1098_v8 = vsel %vm614_vm3, %v4267_v61, 0.0 }
 0x589   : > { %3807 = vpow2.f32 %v1092_v2  ;;  %1099 = vadd.xlane.f32.xlu1 %v1098_v8  ;;  %v1081_v6 = vsub.f32 %v4246_v25, %v1073_v7 }
 0x58a   : > { %3809 = vpow2.f32 %v1088_v27 }
 0x58b   : > { %v1096_v35 = vmul.f32 1.442695, %v1081_v6 }
 0x58c   : > { %v3676_v9 = vpop.permute.xlu0 %3675 }
 0x58d   : > { %v3678_v10 = vunpack.i.h.bf16 %v3676_v9  ;;  %v3677_v11 = vunpack.i.l.bf16 %v3676_v9 }
 0x58f   : > { %v4273_v12 = vpop.eup %3805  ;;  %v3479_v13 = vpack.c.bf16 %v3678_v10, %v3677_v11 }
 0x590   : > { %v1104_v14 = vsel %vm614_vm3, %v4273_v12, 0.0 }
 0x591   : > { %1105 = vadd.xlane.f32.xlu0 %v1104_v14  ;;  %3480 = vmatprep.subr.bf16.mxu1 %v3479_v13 }
 0x592   : > { %3482 = vmatpush3.bf16.msra.mxu1 %v3479_v13 }
 0x593   : > { %v4277_v15 = vpop.eup %3807 }
 0x594   : > { %v1113_v17 = vsel %vm614_vm3, %v4277_v15, 0.0  ;;  %v4285_v43 = vpop.eup %3809 }
 0x595   : > { %1114 = vadd.xlane.f32.xlu0 %v1113_v17 }
 0x59a   : > { %3690 = vrot.lane.b32.xlu1 %v4006_v19, %s3910_s14 }
 0x5ac   : > { %v1064_v30 = vpop.xlane.xlu1 %1063 }
 0x5ad   : > { %v1078_v3 = vsub.f32 %v1046_v32, %v1064_v30  ;;  %v1107_v32 = vsel %vm614_vm3, %v4285_v43, 0.0 }
 0x5af   : > { %v1090_v36 = vmul.f32 1.442695, %v1078_v3 }
 0x5b0   : > { %v3681_v37 = vpop.permute.xlu1 %3680 }
 0x5b1   : > { %3811 = vpow2.f32 %v1090_v36  ;;  %v3683_v40 = vunpack.i.h.bf16 %v3681_v37  ;;  %v3682_v41 = vunpack.i.l.bf16 %v3681_v37 }
 0x5b2   : > { %3813 = vpow2.f32 %v1096_v35 }
 0x5b3   : > { %v3483_v42 = vpack.c.bf16 %v3683_v40, %v3682_v41 }
 0x5b5   : > { %3484 = vmatprep.subr.bf16.mxu1 %v3483_v42 }
 0x5b6   : > { %3486 = vmatpush3.bf16.msra.mxu1 %v3483_v42 }
 0x5bb   : > { %v4287_v51 = vpop.eup %3811 }
 0x5bc   : > { %v1110_v4 = vsel %vm614_vm3, %v4287_v51, 0.0  ;;  %v4291_v25 = vpop.eup %3813 }
 0x5bd   : > { %1111 = vadd.xlane.f32.xlu0 %v1110_v4  ;;  %v1119_v52 = vsel %vm614_vm3, %v4291_v25, 0.0 }
 0x5be   : > { %1108 = vadd.xlane.f32.xlu1 %v1107_v32 }
 0x5c1   : > { %1120 = vadd.xlane.f32.xlu0 %v1119_v52 }
 0x5cf   : > { %3700 = vrot.lane.b32.xlu1 %v4024_v29, %s3910_s14 }
 0x5d3   : > { %3705 = vrot.lane.b32.xlu1 %v4033_v34, %s3910_s14 }
 0x5d7   : > { %1291 = vrot.lane.b32.xlu1 %v4000_v18, %s3911_s15 }
 0x5db   : > { %1293 = vrot.lane.b32.xlu1 %v3998_v16, %s3911_s15 }
 0x5df   : > { %1297 = vrot.lane.b32.xlu1 %v4008_v21, %s3911_s15 }
 0x5e1   : > { %v1070_v53 = vpop.xlane.xlu1 %1069 }
 0x5e2   : > { %v1080_v54 = vsub.f32 %v4260_v22, %v1070_v53 }
 0x5e3   : > { %1301 = vrot.lane.b32.xlu1 %v4017_v26, %s3911_s15 }
 0x5e4   : > { %v1094_v55 = vmul.f32 1.442695, %v1080_v54 }
 0x5e5   : > { %v3686_v56 = vpop.permute.xlu1 %3685 }
 0x5e6   : > { %3815 = vpow2.f32 %v1094_v55  ;;  %v3688_v60 = vunpack.i.h.bf16 %v3686_v56  ;;  %v3687_v62 = vunpack.i.l.bf16 %v3686_v56 }
 0x5e7   : > { %1305 = vrot.lane.b32.xlu1 %v4026_v31, %s3911_s15 }
 0x5e8   : > { %v3487_v63 = vpack.c.bf16 %v3688_v60, %v3687_v62 }
 0x5ea   : > { %3488 = vmatprep.subr.bf16.mxu1 %v3487_v63 }
 0x5eb   : > { %3490 = vmatpush3.bf16.msra.mxu1 %v3487_v63 }
 0x5f0   : > { %v3816_v58 = vpop.eup %3815 }
 0x5f1   : > { %v1116_v57 = vsel %vm614_vm3, %v3816_v58, 0.0 }
 0x5f2   : > { %1117 = vadd.xlane.f32.xlu0 %v1116_v57 }
 0x608   : > { %3695 = vrot.lane.b32.xlu0 %v4015_v24, %s3910_s14  ;;  %s3914_s14 = smov 104  }
 0x60c   : > { %1295 = vrot.lane.b32.xlu0 %v4011_v23, %s3911_s15 }
 0x610   : > { %1299 = vrot.lane.b32.xlu0 %v4020_v28, %s3911_s15 }
 0x614   : > { %1303 = vrot.lane.b32.xlu0 %v4029_v33, %s3911_s15 }
 0x615   : > { %v1103_v22 = vpop.xlane.xlu0 %1102 }
 0x616   : > { %3817 = vrcp.f32 %v1103_v22  ;;  %v1100_v0 = vpop.xlane.xlu1 %1099 }
 0x617   : > { %3819 = vrcp.f32 %v1100_v0 }
 0x61a   : > { %v3691_v1 = vpop.permute.xlu1 %3690 }
 0x61b   : > { %v3693_v2 = vunpack.i.h.bf16 %v3691_v1  ;;  %v3692_v5 = vunpack.i.l.bf16 %v3691_v1 }
 0x61d   : > { %v3491_v7 = vpack.c.bf16 %v3693_v2, %v3692_v5 }
 0x61e   : > { %v1106_v8 = vpop.xlane.xlu0 %1105 }
 0x61f   : > { %3821 = vrcp.f32 %v1106_v8  ;;  %3493 = vmatprep.subr.msk.bf16.mxu1 %vm4038_vm2, %v3491_v7 }
 0x620   : > { %v3818_v9 = vpop.eup %3817 }
 0x621   : > { %v3820_v10 = vpop.eup %3819  ;;  %v1125_v13 = vmul.f32 %v3818_v9, %v4265_v59 }
 0x622   : > { %v1123_v11 = vmul.f32 %v3820_v10, %v4267_v61  ;;  %v1115_v20 = vpop.xlane.xlu0 %1114 }
 0x624   : > { %3259 = vmatprep.mubr.msk.f32.mxu1 %vm614_vm3, %v1123_v11 }
 0x625   : > { %3260 = vmatmul.mubr.msk.f32.vlgmr.msra.gmra.mrb[8].mxu1 %vm614_vm3, %v1125_v13 }
 0x626   : > { %3496 = vmatpush3.bf16.xpose.msk.msra.mxu1 %vm4038_vm2, %v3491_v7 }
 0x629   : > { %v3822_v14 = vpop.eup %3821 }
 0x62a   : > { %v1127_v17 = vmul.f32 %v3822_v14, %v4273_v12 }
 0x62c   : > { %3262 = vmatprep.mubr.msk.f32.mxu1 %vm614_vm3, %v1127_v17 }
 0x64a   : > { %v1112_v6 = vpop.xlane.xlu0 %1111 }
 0x64b   : > { %3823 = vrcp.f32 %v1112_v6  ;;  %v1109_v27 = vpop.xlane.xlu1 %1108  ;;  %v2863_v6 = vld [vmem:[%s5085_s3 + $0x88] sm:$0xff] }
 0x64c   : > { %3825 = vrcp.f32 %v1109_v27 }
 0x64d   : > { %3827 = vrcp.f32 %v1115_v20 }
 0x64e   : > { %v1121_v36 = vpop.xlane.xlu0 %1120 }
 0x64f   : > { %3829 = vrcp.f32 %v1121_v36  ;;  %v3701_v40 = vpop.permute.xlu1 %3700  ;;  %v2865_v36 = vld [vmem:[%s5085_s3 + $0x98] sm:$0xff] }
 0x650   : > { %v3703_v42 = vunpack.i.h.bf16 %v3701_v40  ;;  %v3702_v4 = vunpack.i.l.bf16 %v3701_v40 }
 0x653   : > { %v3706_v53 = vpop.permute.xlu1 %3705 }
 0x654   : > { %v3708_v56 = vunpack.i.h.bf16 %v3706_v53  ;;  %v3707_v60 = vunpack.i.l.bf16 %v3706_v53 }
 0x655   : > { %v3824_v61 = vpop.eup %3823 }
 0x656   : > { %v3826_v59 = vpop.eup %3825  ;;  %v1131_v35 = vmul.f32 %v3824_v61, %v4287_v51  ;;  %v3503_v51 = vpack.c.bf16 %v3703_v42, %v3702_v4  ;;  %v3509_v57 = vpack.c.bf16 %v3708_v56, %v3707_v60 }
 0x657   : > { %v1129_v30 = vmul.f32 %v3826_v59, %v4285_v43  ;;  %v3828_v3 = vpop.eup %3827  ;;  %v1292_v63 = vpop.permute.xlu1 %1291  ;;  %v2862_v59 = vld [vmem:[%s5085_s3 + $0x80] sm:$0xff] }
 0x658   : > { %v1133_v12 = vmul.f32 %v3828_v3, %v4277_v15 }
 0x659   : > { %3263 = vmatmul.mubr.msk.f32.gmra.mrb[10].mxu1 %vm614_vm3, %v1129_v30  ;;  %v3830_v54 = vpop.eup %3829 }
 0x65a   : > { %3265 = vmatprep.mubr.msk.f32.mxu1 %vm614_vm3, %v1131_v35  ;;  %v1137_v62 = vmul.f32 %v3830_v54, %v4291_v25 }
 0x65b   : > { %v1294_v22 = vpop.permute.xlu1 %1293 }
 0x65d   : > { %3266 = vmatmul.mubr.msk.f32.gmra.mrb[12].mxu1 %vm614_vm3, %v1133_v12 }
 0x65f   : > { %v1298_v25 = vpop.permute.xlu1 %1297 }
 0x663   : > { %v1302_v1 = vpop.permute.xlu1 %1301 }
 0x667   : > { %v1306_v5 = vpop.permute.xlu1 %1305 }
 0x67f   : > { %v1118_v37 = vpop.xlane.xlu0 %1117 }
 0x680   : > { %3831 = vrcp.f32 %v1118_v37 }
 0x683   : > { %v3696_v41 = vpop.permute.xlu0 %3695 }
 0x684   : > { %v3698_v43 = vunpack.i.h.bf16 %v3696_v41  ;;  %v3697_v32 = vunpack.i.l.bf16 %v3696_v41 }
 0x686   : > { %v3497_v52 = vpack.c.bf16 %v3698_v43, %v3697_v32  ;;  %v2864_v32 = vld [vmem:[%s5085_s3 + $0x90] sm:$0xff] }
 0x688   : > { %3499 = vmatprep.subr.msk.bf16.mxu1 %vm4038_vm2, %v3497_v52 }
 0x689   : > { %3502 = vmatpush3.bf16.xpose.msk.msra.mxu1 %vm4038_vm2, %v3497_v52 }
 0x68a   : > { %v3832_v15 = vpop.eup %3831  ;;  %3505 = vmatprep.subr.msk.bf16.mxu1 %vm4038_vm2, %v3503_v51 }
 0x68b   : > { %v1135_v55 = vmul.f32 %v3832_v15, %v3816_v58  ;;  %v1296_v58 = vpop.permute.xlu0 %1295 }
 0x68d   : > { %3268 = vmatprep.mubr.msk.f32.mxu1 %vm614_vm3, %v1135_v55  ;;  %v2867_v55 = vld [vmem:[%s5085_s3 + $0xa8] sm:$0xff] }
 0x68e   : > { %3269 = vmatmul.mubr.msk.f32.gmra.mrb[14].mxu1 %vm614_vm3, %v1137_v62 }
 0x68f   : > { %3287 = vmatprep.mubr.msk.f32.mxu1 %vm452_vm1, %v1292_v63  ;;  %v1300_v0 = vpop.permute.xlu0 %1299 }
 0x691   : > { %3508 = vmatpush3.bf16.xpose.msk.msra.mxu1 %vm4038_vm2, %v3503_v51 }
 0x692   : > { %3511 = vmatprep.subr.msk.bf16.mxu1 %vm4038_vm2, %v3509_v57 }
 0x693   : > { %v1304_v2 = vpop.permute.xlu0 %1303 }
 0x699   : > { %3514 = vmatpush3.bf16.xpose.msk.msra.mxu1 %vm4038_vm2, %v3509_v57 }
 0x6a0   : > { %3288 = vmatmul.mubr.msk.f32.vlgmr.msra.gmra.mrb[16].mxu1 %vm452_vm1, %v1294_v22  ;;  %v2869_v22 = vld [vmem:[%s5085_s3 + $0xb8] sm:$0xff] }
 0x6a1   : > { %3290 = vmatprep.mubr.msk.f32.mxu1 %vm452_vm1, %v1296_v58 }
 0x6a4   : > { %3291 = vmatmul.mubr.msk.f32.gmra.mrb[18].mxu1 %vm452_vm1, %v1298_v25 }
 0x6a5   : > { %3293 = vmatprep.mubr.msk.f32.mxu1 %vm452_vm1, %v1300_v0 }
 0x6a8   : > { %3294 = vmatmul.mubr.msk.f32.gmra.mrb[20].mxu1 %vm452_vm1, %v1302_v1 }
 0x6a9   : > { %3296 = vmatprep.mubr.msk.f32.mxu1 %vm452_vm1, %v1304_v2  ;;  %v2866_v2 = vld [vmem:[%s5085_s3 + $0xa0] sm:$0xff] }
 0x6ac   : > { %3297 = vmatmul.mubr.msk.f32.gmra.mrb[22].mxu1 %vm452_vm1, %v1306_v5 }
 0x6f8   : > { %v4352_v7 = vpop.f32.mrb[8].mxu1 }
 0x6f9   : > { %v4354_v8 = vpop.f32.mrb[9].mxu1 }
 0x72c   : > { %v4356_v9 = vpop.f32.mrb[10].mxu1 }
 0x72d   : > { %v4358_v10 = vpop.f32.mrb[11].mxu1 }
 0x730   : > { %v4360_v11 = vpop.f32.mrb[12].mxu1 }
 0x731   : > { %v4362_v13 = vpop.f32.mrb[13].mxu1 }
 0x761   : > { %v4364_v14 = vpop.f32.mrb[14].mxu1 }
 0x762   : > { %v4366_v17 = vpop.f32.mrb[15].mxu1 }
 0x773   : > { %v3289_v20 = vpop.f32.mrb[16].mxu1 }
 0x774   : > { %v1461_v27 = vmul.f32 0.35355338, %v3289_v20  ;;  %v1421_v61 = vpop.f32.mrb[17].mxu1 }
 0x775   : > { %v1460_v30 = vmul.f32 0.35355338, %v1421_v61 }
 0x776   : > { %v1478_v3 = vadd.f32 %v2863_v6, %v1461_v27  ;;  %v2868_v27 = vld [vmem:[%s5085_s3 + $0xb0] sm:$0xff] }
 0x777   : > { %v3292_v35 = vpop.f32.mrb[18].mxu1  ;;  %v1477_v12 = vadd.f32 %v2862_v59, %v1460_v30 }
 0x778   : > { %v1463_v37 = vmul.f32 0.35355338, %v3292_v35  ;;  %v1431_v40 = vpop.f32.mrb[19].mxu1  ;;  %v1488_v41 = vsel %vm614_vm3, %v1478_v3, -inf }
 0x779   : > { %v1462_v42 = vmul.f32 0.35355338, %v1431_v40  ;;  %1489 = vmax.xlane.f32.xlu1 %v1488_v41  ;;  %v1485_v4 = vsel %vm614_vm3, %v1477_v12, -inf }
 0x77a   : > { %1486 = vmax.xlane.f32.xlu0 %v1485_v4  ;;  %v4379_v43 = vadd.f32 %v2865_v36, %v1463_v37 }
 0x77b   : > { %v3295_v52 = vpop.f32.mrb[20].mxu1  ;;  %v1479_v15 = vadd.f32 %v2864_v32, %v1462_v42 }
 0x77c   : > { %v1441_v51 = vpop.f32.mrb[21].mxu1  ;;  %v1494_v53 = vsel %vm614_vm3, %v4379_v43, -inf  ;;  %v1465_v54 = vmul.f32 0.35355338, %v3295_v52 }
 0x77d   : > { %v1491_v63 = vsel %vm614_vm3, %v1479_v15, -inf  ;;  %v1464_v1 = vmul.f32 0.35355338, %v1441_v51 }
 0x77e   : > { %1495 = vmax.xlane.f32.xlu0 %v1494_v53  ;;  %v1482_v57 = vadd.f32 %v2867_v55, %v1465_v54 }
 0x77f   : > { %v3298_v56 = vpop.f32.mrb[22].mxu1  ;;  %v1481_v5 = vadd.f32 %v2866_v2, %v1464_v1 }
 0x780   : > { %v1451_v60 = vpop.f32.mrb[23].mxu1  ;;  %v1467_v62 = vmul.f32 0.35355338, %v3298_v56  ;;  %v1500_v58 = vsel %vm614_vm3, %v1482_v57, -inf }
 0x781   : > { %v1497_v20 = vsel %vm614_vm3, %v1481_v5, -inf  ;;  %v1466_v6 = vmul.f32 0.35355338, %v1451_v60 }
 0x782   : > { %1492 = vmax.xlane.f32.xlu0 %v1491_v63  ;;  %v4394_v25 = vadd.f32 %v2869_v22, %v1467_v62 }
 0x783   : > { %v4408_v61 = vadd.f32 %v2868_v27, %v1466_v6 }
 0x784   : > { %v1506_v0 = vsel %vm614_vm3, %v4394_v25, -inf }
 0x785   : > { %v1503_v59 = vsel %vm614_vm3, %v4408_v61, -inf }
 0x786   : > { %1501 = vmax.xlane.f32.xlu0 %v1500_v58 }
 0x78a   : > { %3710 = vrot.lane.b32.xlu1 %v4006_v19, %s3912_s30  ;;  %1507 = vmax.xlane.f32.xlu0 %v1506_v0 }
 0x7a0   : > { %3715 = vrot.lane.b32.xlu0 %v4015_v24, %s3912_s30 }
 0x7ae   : > { %1498 = vmax.xlane.f32.xlu1 %v1497_v20 }
 0x7bf   : > { %3720 = vrot.lane.b32.xlu1 %v4024_v29, %s3912_s30 }
 0x7e3   : > { %1504 = vmax.xlane.f32.xlu1 %v1503_v59 }
 0x7f4   : > { %3725 = vrot.lane.b32.xlu1 %v4033_v34, %s3912_s30 }
 0x806   : > { %v1490_v30 = vpop.xlane.xlu1 %1489 }
 0x807   : > { %v1510_v35 = vsub.f32 %v1478_v3, %v1490_v30  ;;  %v1487_v36 = vpop.xlane.xlu0 %1486 }
 0x808   : > { %v1509_v37 = vsub.f32 %v1477_v12, %v1487_v36 }
 0x809   : > { %v1519_v40 = vmul.f32 1.442695, %v1510_v35 }
 0x80a   : > { %v1517_v41 = vmul.f32 1.442695, %v1509_v37  ;;  %v3711_v42 = vpop.permute.xlu1 %3710 }
 0x80b   : > { %3833 = vpow2.f32 %v1519_v40  ;;  %v3713_v4 = vunpack.i.h.bf16 %v3711_v42  ;;  %v3712_v32 = vunpack.i.l.bf16 %v3711_v42  ;;  %v1496_v52 = vpop.xlane.xlu0 %1495 }
 0x80c   : > { %3835 = vpow2.f32 %v1517_v41  ;;  %v1512_v59 = vsub.f32 %v4379_v43, %v1496_v52 }
 0x80d   : > { %v3515_v51 = vpack.c.bf16 %v3713_v4, %v3712_v32 }
 0x80e   : > { %v1523_v35 = vmul.f32 1.442695, %v1512_v59 }
 0x80f   : > { %3516 = vmatprep.subr.bf16.mxu0 %v3515_v51  ;;  %v1493_v53 = vpop.xlane.xlu0 %1492 }
 0x810   : > { %v1511_v54 = vsub.f32 %v1479_v15, %v1493_v53  ;;  %3518 = vmatpush3.bf16.msra.mxu0 %v3515_v51 }
 0x812   : > { %v1521_v55 = vmul.f32 1.442695, %v1511_v54 }
 0x813   : > { %v1502_v56 = vpop.xlane.xlu0 %1501 }
 0x814   : > { %3837 = vpow2.f32 %v1521_v55  ;;  %v1514_v60 = vsub.f32 %v1482_v57, %v1502_v56 }
 0x815   : > { %v4413_v3 = vpop.eup %3833 }
 0x816   : > { %v4415_v12 = vpop.eup %3835  ;;  %v1527_v62 = vmul.f32 1.442695, %v1514_v60  ;;  %v1536_v63 = vsel %vm614_vm3, %v4413_v3, 0.0 }
 0x817   : > { %1537 = vadd.xlane.f32.xlu0 %v1536_v63  ;;  %v1508_v22 = vpop.xlane.xlu0 %1507  ;;  %v1533_v58 = vsel %vm614_vm3, %v4415_v12, 0.0 }
 0x818   : > { %3839 = vpow2.f32 %v1527_v62  ;;  %1534 = vadd.xlane.f32.xlu1 %v1533_v58  ;;  %v1516_v30 = vsub.f32 %v4394_v25, %v1508_v22 }
 0x819   : > { %3841 = vpow2.f32 %v1523_v35 }
 0x81a   : > { %v1531_v40 = vmul.f32 1.442695, %v1516_v30 }
 0x81b   : > { %v3716_v15 = vpop.permute.xlu0 %3715 }
 0x81c   : > { %v3718_v0 = vunpack.i.h.bf16 %v3716_v15  ;;  %v3717_v1 = vunpack.i.l.bf16 %v3716_v15 }
 0x81e   : > { %v4421_v2 = vpop.eup %3837  ;;  %v3519_v57 = vpack.c.bf16 %v3718_v0, %v3717_v1 }
 0x81f   : > { %v1539_v20 = vsel %vm614_vm3, %v4421_v2, 0.0 }
 0x820   : > { %1540 = vadd.xlane.f32.xlu0 %v1539_v20  ;;  %3520 = vmatprep.subr.bf16.mxu0 %v3519_v57 }
 0x821   : > { %3522 = vmatpush3.bf16.msra.mxu0 %v3519_v57 }
 0x822   : > { %v4425_v6 = vpop.eup %3839 }
 0x823   : > { %v1548_v27 = vsel %vm614_vm3, %v4425_v6, 0.0  ;;  %v4433_v53 = vpop.eup %3841 }
 0x824   : > { %1549 = vadd.xlane.f32.xlu0 %v1548_v27 }
 0x829   : > { %3730 = vrot.lane.b32.xlu1 %v4006_v19, %s3913_s13 }
 0x83b   : > { %v1499_v36 = vpop.xlane.xlu1 %1498 }
 0x83c   : > { %v1513_v37 = vsub.f32 %v1481_v5, %v1499_v36  ;;  %v1542_v5 = vsel %vm614_vm3, %v4433_v53, 0.0 }
 0x83e   : > { %v1525_v41 = vmul.f32 1.442695, %v1513_v37 }
 0x83f   : > { %v3721_v42 = vpop.permute.xlu1 %3720 }
 0x840   : > { %3843 = vpow2.f32 %v1525_v41  ;;  %v3723_v4 = vunpack.i.h.bf16 %v3721_v42  ;;  %v3722_v32 = vunpack.i.l.bf16 %v3721_v42 }
 0x841   : > { %3845 = vpow2.f32 %v1531_v40 }
 0x842   : > { %v3523_v51 = vpack.c.bf16 %v3723_v4, %v3722_v32 }
 0x844   : > { %3524 = vmatprep.subr.bf16.mxu0 %v3523_v51 }
 0x845   : > { %3526 = vmatpush3.bf16.msra.mxu0 %v3523_v51 }
 0x84a   : > { %v4435_v54 = vpop.eup %3843 }
 0x84b   : > { %v1545_v43 = vsel %vm614_vm3, %v4435_v54, 0.0  ;;  %v4439_v25 = vpop.eup %3845 }
 0x84c   : > { %1546 = vadd.xlane.f32.xlu0 %v1545_v43  ;;  %v1554_v52 = vsel %vm614_vm3, %v4439_v25, 0.0 }
 0x84d   : > { %1543 = vadd.xlane.f32.xlu1 %v1542_v5 }
 0x850   : > { %1555 = vadd.xlane.f32.xlu0 %v1554_v52 }
 0x85e   : > { %3740 = vrot.lane.b32.xlu1 %v4024_v29, %s3913_s13 }
 0x862   : > { %3745 = vrot.lane.b32.xlu1 %v4033_v34, %s3913_s13 }
 0x866   : > { %1726 = vrot.lane.b32.xlu1 %v4000_v18, %s3914_s14 }
 0x86a   : > { %1728 = vrot.lane.b32.xlu1 %v3998_v16, %s3914_s14 }
 0x86e   : > { %1732 = vrot.lane.b32.xlu1 %v4008_v21, %s3914_s14 }
 0x870   : > { %v1505_v55 = vpop.xlane.xlu1 %1504 }
 0x871   : > { %v1515_v56 = vsub.f32 %v4408_v61, %v1505_v55 }
 0x872   : > { %1736 = vrot.lane.b32.xlu1 %v4017_v26, %s3914_s14 }
 0x873   : > { %v1529_v60 = vmul.f32 1.442695, %v1515_v56 }
 0x874   : > { %v3726_v62 = vpop.permute.xlu1 %3725 }
 0x875   : > { %3847 = vpow2.f32 %v1529_v60  ;;  %v3728_v63 = vunpack.i.h.bf16 %v3726_v62  ;;  %v3727_v22 = vunpack.i.l.bf16 %v3726_v62 }
 0x876   : > { %1740 = vrot.lane.b32.xlu1 %v4026_v31, %s3914_s14 }
 0x877   : > { %v3527_v58 = vpack.c.bf16 %v3728_v63, %v3727_v22 }
 0x879   : > { %3528 = vmatprep.subr.bf16.mxu0 %v3527_v58 }
 0x87a   : > { %3530 = vmatpush3.bf16.msra.mxu0 %v3527_v58 }
 0x87f   : > { %v3848_v18 = vpop.eup %3847 }
 0x880   : > { %v1551_v16 = vsel %vm614_vm3, %v3848_v18, 0.0 }
 0x881   : > { %1552 = vadd.xlane.f32.xlu0 %v1551_v16 }
 0x897   : > { %3735 = vrot.lane.b32.xlu0 %v4015_v24, %s3913_s13  ;;  %s3917_s13 = smov 16  }
 0x89b   : > { %1730 = vrot.lane.b32.xlu0 %v4011_v23, %s3914_s14 }
 0x89f   : > { %1734 = vrot.lane.b32.xlu0 %v4020_v28, %s3914_s14 }
 0x8a3   : > { %1738 = vrot.lane.b32.xlu0 %v4029_v33, %s3914_s14  ;;  %s3918_s14 = smov 24  }
 0x8a4   : > { %v1538_v21 = vpop.xlane.xlu0 %1537 }
 0x8a5   : > { %3849 = vrcp.f32 %v1538_v21  ;;  %v1535_v26 = vpop.xlane.xlu1 %1534 }
 0x8a6   : > { %3851 = vrcp.f32 %v1535_v26 }
 0x8a9   : > { %v3731_v31 = vpop.permute.xlu1 %3730 }
 0x8aa   : > { %v3733_v61 = vunpack.i.h.bf16 %v3731_v31  ;;  %v3732_v15 = vunpack.i.l.bf16 %v3731_v31 }
 0x8ac   : > { %v3531_v0 = vpack.c.bf16 %v3733_v61, %v3732_v15 }
 0x8ad   : > { %v1541_v1 = vpop.xlane.xlu0 %1540 }
 0x8ae   : > { %3853 = vrcp.f32 %v1541_v1  ;;  %3533 = vmatprep.subr.msk.bf16.mxu0 %vm4038_vm2, %v3531_v0 }
 0x8af   : > { %v3850_v57 = vpop.eup %3849 }
 0x8b0   : > { %v3852_v20 = vpop.eup %3851  ;;  %v1560_v28 = vmul.f32 %v3850_v57, %v4413_v3 }
 0x8b1   : > { %v1558_v23 = vmul.f32 %v3852_v20, %v4415_v12  ;;  %v1550_v59 = vpop.xlane.xlu0 %1549 }
 0x8b3   : > { %3315 = vmatprep.mubr.msk.f32.mxu0 %vm614_vm3, %v1558_v23 }
 0x8b4   : > { %3316 = vmatmul.mubr.msk.f32.vlgmr.msra.gmra.mrb[24].mxu0 %vm614_vm3, %v1560_v28 }
 0x8b5   : > { %3536 = vmatpush3.bf16.xpose.msk.msra.mxu0 %vm4038_vm2, %v3531_v0 }
 0x8b8   : > { %v3854_v33 = vpop.eup %3853 }
 0x8b9   : > { %v1562_v27 = vmul.f32 %v3854_v33, %v4421_v2 }
 0x8bb   : > { %3318 = vmatprep.mubr.msk.f32.mxu0 %vm614_vm3, %v1562_v27 }
 0x8d9   : > { %v1547_v30 = vpop.xlane.xlu0 %1546 }
 0x8da   : > { %3855 = vrcp.f32 %v1547_v30  ;;  %v1544_v35 = vpop.xlane.xlu1 %1543 }
 0x8db   : > { %3857 = vrcp.f32 %v1544_v35 }
 0x8dc   : > { %3859 = vrcp.f32 %v1550_v59  ;;  %v2895_v59 = vld [vmem:[%s5085_s3 + $0xc8] sm:$0xff] }
 0x8dd   : > { %v1556_v41 = vpop.xlane.xlu0 %1555 }
 0x8de   : > { %3861 = vrcp.f32 %v1556_v41  ;;  %v3741_v4 = vpop.permute.xlu1 %3740 }
 0x8df   : > { %v3743_v51 = vunpack.i.h.bf16 %v3741_v4  ;;  %v3742_v43 = vunpack.i.l.bf16 %v3741_v4 }
 0x8e2   : > { %v3746_v55 = vpop.permute.xlu1 %3745 }
 0x8e3   : > { %v3748_v62 = vunpack.i.h.bf16 %v3746_v55  ;;  %v3747_v63 = vunpack.i.l.bf16 %v3746_v55  ;;  %v2898_v55 = vld [vmem:[%s5085_s3 + $0xe0] sm:$0xff] }
 0x8e4   : > { %v3856_v12 = vpop.eup %3855 }
 0x8e5   : > { %v3858_v3 = vpop.eup %3857  ;;  %v1566_v40 = vmul.f32 %v3856_v12, %v4435_v54  ;;  %v3543_v54 = vpack.c.bf16 %v3743_v51, %v3742_v43  ;;  %v3549_v16 = vpack.c.bf16 %v3748_v62, %v3747_v63  ;;  %v2894_v12 = vld [vmem:[%s5085_s3 + $0xc0] sm:$0xff]  ;;  %v2899_v62 = vld [vmem:[%s5085_s3 + $0xe8] sm:$0xff] }
 0x8e6   : > { %v1564_v36 = vmul.f32 %v3858_v3, %v4433_v53  ;;  %v3860_v37 = vpop.eup %3859  ;;  %v1727_v58 = vpop.permute.xlu1 %1726 }
 0x8e7   : > { %v1568_v2 = vmul.f32 %v3860_v37, %v4425_v6 }
 0x8e8   : > { %3319 = vmatmul.mubr.msk.f32.gmra.mrb[26].mxu0 %vm614_vm3, %v1564_v36  ;;  %v3862_v56 = vpop.eup %3861 }
 0x8e9   : > { %3321 = vmatprep.mubr.msk.f32.mxu0 %vm614_vm3, %v1566_v40  ;;  %v1572_v22 = vmul.f32 %v3862_v56, %v4439_v25 }
 0x8ea   : > { %v1729_v21 = vpop.permute.xlu1 %1728 }
 0x8ec   : > { %3322 = vmatmul.mubr.msk.f32.gmra.mrb[28].mxu0 %vm614_vm3, %v1568_v2 }
 0x8ee   : > { %v1733_v25 = vpop.permute.xlu1 %1732 }
 0x8f2   : > { %v1737_v31 = vpop.permute.xlu1 %1736 }
 0x8f6   : > { %v1741_v15 = vpop.permute.xlu1 %1740 }
 0x90e   : > { %v1553_v42 = vpop.xlane.xlu0 %1552 }
 0x90f   : > { %3863 = vrcp.f32 %v1553_v42  ;;  %v2896_v42 = vld [vmem:[%s5085_s3 + $0xd0] sm:$0xff] }
 0x912   : > { %v3736_v32 = vpop.permute.xlu0 %3735 }
 0x913   : > { %v3738_v53 = vunpack.i.h.bf16 %v3736_v32  ;;  %v3737_v5 = vunpack.i.l.bf16 %v3736_v32  ;;  %v2897_v32 = vld [vmem:[%s5085_s3 + $0xd8] sm:$0xff] }
 0x915   : > { %v3537_v52 = vpack.c.bf16 %v3738_v53, %v3737_v5 }
 0x917   : > { %3539 = vmatprep.subr.msk.bf16.mxu0 %vm4038_vm2, %v3537_v52 }
 0x918   : > { %3542 = vmatpush3.bf16.xpose.msk.msra.mxu0 %vm4038_vm2, %v3537_v52 }
 0x919   : > { %v3864_v6 = vpop.eup %3863  ;;  %3545 = vmatprep.subr.msk.bf16.mxu0 %vm4038_vm2, %v3543_v54 }
 0x91a   : > { %v1570_v60 = vmul.f32 %v3864_v6, %v3848_v18  ;;  %v1731_v18 = vpop.permute.xlu0 %1730 }
 0x91c   : > { %3324 = vmatprep.mubr.msk.f32.mxu0 %vm614_vm3, %v1570_v60 }
 0x91d   : > { %3325 = vmatmul.mubr.msk.f32.gmra.mrb[30].mxu0 %vm614_vm3, %v1572_v22 }
 0x91e   : > { %3343 = vmatprep.mubr.msk.f32.mxu0 %vm452_vm1, %v1727_v58  ;;  %v1735_v26 = vpop.permute.xlu0 %1734 }
 0x920   : > { %3548 = vmatpush3.bf16.xpose.msk.msra.mxu0 %vm4038_vm2, %v3543_v54 }
 0x921   : > { %3551 = vmatprep.subr.msk.bf16.mxu0 %vm4038_vm2, %v3549_v16 }
 0x922   : > { %v1739_v61 = vpop.permute.xlu0 %1738 }
 0x928   : > { %3554 = vmatpush3.bf16.xpose.msk.msra.mxu0 %vm4038_vm2, %v3549_v16  ;;  %v2900_v16 = vld [vmem:[%s5085_s3 + $0xf0] sm:$0xff] }
 0x92f   : > { %3344 = vmatmul.mubr.msk.f32.vlgmr.msra.gmra.mrb[32].mxu0 %vm452_vm1, %v1729_v21 }
 0x930   : > { %3346 = vmatprep.mubr.msk.f32.mxu0 %vm452_vm1, %v1731_v18 }
 0x933   : > { %3347 = vmatmul.mubr.msk.f32.gmra.mrb[34].mxu0 %vm452_vm1, %v1733_v25 }
 0x934   : > { %3349 = vmatprep.mubr.msk.f32.mxu0 %vm452_vm1, %v1735_v26 }
 0x937   : > { %3350 = vmatmul.mubr.msk.f32.gmra.mrb[36].mxu0 %vm452_vm1, %v1737_v31 }
 0x938   : > { %3352 = vmatprep.mubr.msk.f32.mxu0 %vm452_vm1, %v1739_v61  ;;  %v2901_v61 = vld [vmem:[%s5085_s3 + $0xf8] sm:$0xff] }
 0x93b   : > { %3353 = vmatmul.mubr.msk.f32.gmra.mrb[38].mxu0 %vm452_vm1, %v1741_v15 }
 0x987   : > { %v4500_v38 = vpop.f32.mrb[24].mxu0 }
 0x988   : > { %v4502_v0 = vpop.f32.mrb[25].mxu0 }
 0x9bb   : > { %v4504_v1 = vpop.f32.mrb[26].mxu0 }
 0x9bc   : > { %v4506_v57 = vpop.f32.mrb[27].mxu0 }
 0x9bf   : > { %v4508_v20 = vpop.f32.mrb[28].mxu0 }
 0x9c0   : > { %v4510_v23 = vpop.f32.mrb[29].mxu0 }
 0x9f0   : > { %v4512_v28 = vpop.f32.mrb[30].mxu0 }
 0x9f1   : > { %v4514_v33 = vpop.f32.mrb[31].mxu0 }
 0xa02   : > { %v3345_v27 = vpop.f32.mrb[32].mxu0 }
 0xa03   : > { %v1896_v30 = vmul.f32 0.35355338, %v3345_v27  ;;  %v1856_v35 = vpop.f32.mrb[33].mxu0 }
 0xa04   : > { %v1895_v3 = vmul.f32 0.35355338, %v1856_v35 }
 0xa05   : > { %v1913_v36 = vadd.f32 %v2895_v59, %v1896_v30 }
 0xa06   : > { %v1912_v37 = vadd.f32 %v2894_v12, %v1895_v3  ;;  %v3348_v40 = vpop.f32.mrb[34].mxu0 }
 0xa07   : > { %v1898_v2 = vmul.f32 0.35355338, %v3348_v40  ;;  %v1866_v41 = vpop.f32.mrb[35].mxu0  ;;  %v1923_v4 = vsel %vm614_vm3, %v1913_v36, -inf }
 0xa08   : > { %v1897_v51 = vmul.f32 0.35355338, %v1866_v41  ;;  %1924 = vmax.xlane.f32.xlu1 %v1923_v4  ;;  %v1920_v43 = vsel %vm614_vm3, %v1912_v37, -inf }
 0xa09   : > { %1921 = vmax.xlane.f32.xlu0 %v1920_v43  ;;  %v1915_v52 = vadd.f32 %v2897_v32, %v1898_v2 }
 0xa0a   : > { %v1914_v53 = vadd.f32 %v2896_v42, %v1897_v51  ;;  %v3351_v5 = vpop.f32.mrb[36].mxu0 }
 0xa0b   : > { %v1876_v54 = vpop.f32.mrb[37].mxu0  ;;  %v1900_v56 = vmul.f32 0.35355338, %v3351_v5  ;;  %v1929_v21 = vsel %vm614_vm3, %v1915_v52, -inf }
 0xa0c   : > { %v1899_v6 = vmul.f32 0.35355338, %v1876_v54  ;;  %v1926_v60 = vsel %vm614_vm3, %v1914_v53, -inf }
 0xa0d   : > { %1927 = vmax.xlane.f32.xlu0 %v1926_v60  ;;  %v1917_v18 = vadd.f32 %v2899_v62, %v1900_v56 }
 0xa0e   : > { %v1916_v63 = vadd.f32 %v2898_v55, %v1899_v6  ;;  %v3354_v22 = vpop.f32.mrb[38].mxu0 }
 0xa0f   : > { %v1886_v58 = vpop.f32.mrb[39].mxu0  ;;  %v1902_v25 = vmul.f32 0.35355338, %v3354_v22  ;;  %v1935_v59 = vsel %vm614_vm3, %v1917_v18, -inf }
 0xa10   : > { %v1901_v26 = vmul.f32 0.35355338, %v1886_v58  ;;  %v1932_v31 = vsel %vm614_vm3, %v1916_v63, -inf }
 0xa11   : > { %1930 = vmax.xlane.f32.xlu0 %v1929_v21  ;;  %1933 = vmax.xlane.f32.xlu1 %v1932_v31  ;;  %v1919_v27 = vadd.f32 %v2901_v61, %v1902_v25 }
 0xa12   : > { %v1918_v15 = vadd.f32 %v2900_v16, %v1901_v26 }
 0xa13   : > { %v1941_v35 = vsel %vm614_vm3, %v1919_v27, -inf }
 0xa14   : > { %v1938_v30 = vsel %vm614_vm3, %v1918_v15, -inf }
 0xa15   : > { %1936 = vmax.xlane.f32.xlu0 %v1935_v59  ;;  %1939 = vmax.xlane.f32.xlu1 %v1938_v30 }
 0xa19   : > { %1942 = vmax.xlane.f32.xlu0 %v1941_v35 }
 0xa26   : > { %3750 = vrot.lane.b32.xlu1 %v4006_v19, %s3915_s10 }
 0xa95   : > { %v1925_v12 = vpop.xlane.xlu1 %1924 }
 0xa96   : > { %v1945_v3 = vsub.f32 %v1913_v36, %v1925_v12  ;;  %v1922_v40 = vpop.xlane.xlu0 %1921 }
 0xa97   : > { %v1944_v2 = vsub.f32 %v1912_v37, %v1922_v40 }
 0xa98   : > { %v1954_v41 = vmul.f32 1.442695, %v1945_v3 }
 0xa99   : > { %v1952_v42 = vmul.f32 1.442695, %v1944_v2 }
 0xa9a   : > { %3865 = vpow2.f32 %v1954_v41  ;;  %v1928_v4 = vpop.xlane.xlu0 %1927 }
 0xa9b   : > { %3867 = vpow2.f32 %v1952_v42  ;;  %v1946_v32 = vsub.f32 %v1914_v53, %v1928_v4 }
 0xa9d   : > { %v1956_v51 = vmul.f32 1.442695, %v1946_v32 }
 0xa9e   : > { %v1931_v43 = vpop.xlane.xlu0 %1930  ;;  %v1934_v5 = vpop.xlane.xlu1 %1933 }
 0xa9f   : > { %3869 = vpow2.f32 %v1956_v51  ;;  %v1947_v54 = vsub.f32 %v1915_v52, %v1931_v43  ;;  %v1948_v55 = vsub.f32 %v1916_v63, %v1934_v5 }
 0xaa1   : > { %v1958_v56 = vmul.f32 1.442695, %v1947_v54  ;;  %v1960_v6 = vmul.f32 1.442695, %v1948_v55 }
 0xaa2   : > { %v1937_v60 = vpop.xlane.xlu0 %1936  ;;  %v1940_v19 = vpop.xlane.xlu1 %1939 }
 0xaa3   : > { %3871 = vpow2.f32 %v1958_v56  ;;  %v1949_v36 = vsub.f32 %v1917_v18, %v1937_v60  ;;  %v1950_v58 = vsub.f32 %v1918_v15, %v1940_v19 }
 0xaa4   : > { %v4550_v62 = vpop.eup %3865  ;;  %3873 = vpow2.f32 %v1960_v6 }
 0xaa5   : > { %v4552_v37 = vpop.eup %3867  ;;  %v1962_v22 = vmul.f32 1.442695, %v1949_v36  ;;  %v1971_v53 = vsel %vm614_vm3, %v4550_v62, 0.0  ;;  %v1964_v31 = vmul.f32 1.442695, %v1950_v58 }
 0xaa6   : > { %1972 = vadd.xlane.f32.xlu0 %v1971_v53  ;;  %v1943_v16 = vpop.xlane.xlu0 %1942  ;;  %v3751_v52 = vpop.permute.xlu1 %3750  ;;  %v1968_v63 = vsel %vm614_vm3, %v4552_v37, 0.0 }
 0xaa7   : > { %3875 = vpow2.f32 %v1962_v22  ;;  %v1951_v21 = vsub.f32 %v1919_v27, %v1943_v16  ;;  %v3753_v25 = vunpack.i.h.bf16 %v3751_v52  ;;  %v3752_v18 = vunpack.i.l.bf16 %v3751_v52  ;;  %1969 = vadd.xlane.f32.xlu1 %v1968_v63 }
 0xaa9   : > { %v3870_v26 = vpop.eup %3869  ;;  %v1966_v61 = vmul.f32 1.442695, %v1951_v21  ;;  %v3555_v59 = vpack.c.bf16 %v3753_v25, %v3752_v18 }
 0xaaa   : > { %v1974_v15 = vsel %vm614_vm3, %v3870_v26, 0.0 }
 0xaab   : > { %3877 = vpow2.f32 %v1966_v61  ;;  %1975 = vadd.xlane.f32.xlu1 %v1974_v15  ;;  %3556 = vmatprep.subr.bf16.mxu0 %v3555_v59  ;;  %v2569_v15 = vld [vmem:[%s5087_s5] sm:$0xff] }
 0xaac   : > { %3579 = vmatprep.subr.bf16.mxu1 %v3555_v59  ;;  %3558 = vmatpush3.bf16.msra.mxu0 %v3555_v59  ;;  %3879 = vpow2.f32 %v1964_v31 }
 0xaad   : > { %v4559_v30 = vpop.eup %3871  ;;  %3583 = vmatpush3.bf16.msra.mxu1 %v3555_v59 }
 0xaae   : > { %v4561_v35 = vpop.eup %3873  ;;  %v1977_v27 = vsel %vm614_vm3, %v4559_v30, 0.0 }
 0xaaf   : > { %1978 = vadd.xlane.f32.xlu0 %v1977_v27  ;;  %v1980_v12 = vsel %vm614_vm3, %v4561_v35, 0.0  ;;  %v2571_v27 = vld [vmem:[%s5087_s5 + $0x10] sm:$0xff] }
 0xab0   : > { %1981 = vadd.xlane.f32.xlu1 %v1980_v12  ;;  %v2572_v12 = vld [vmem:[%s5087_s5 + $0x18] sm:$0xff] }
 0xab1   : > { %v4567_v3 = vpop.eup %3875 }
 0xab2   : > { %v1983_v40 = vsel %vm614_vm3, %v4567_v3, 0.0 }
 0xab3   : > { %1984 = vadd.xlane.f32.xlu0 %v1983_v40 }
 0xab5   : > { %v4571_v2 = vpop.eup %3877 }
 0xab6   : > { %v1989_v41 = vsel %vm614_vm3, %v4571_v2, 0.0  ;;  %v4575_v42 = vpop.eup %3879 }
 0xab7   : > { %1990 = vadd.xlane.f32.xlu0 %v1989_v41  ;;  %v1986_v4 = vsel %vm614_vm3, %v4575_v42, 0.0 }
 0xabb   : > { %1987 = vadd.xlane.f32.xlu0 %v1986_v4 }
 0xac1   : > { %3760 = vrot.lane.b32.xlu1 %v4024_v29, %s3915_s10 }
 0xac5   : > { %3765 = vrot.lane.b32.xlu1 %v4033_v34, %s3915_s10 }
 0xac9   : > { %2169 = vrot.lane.b32.xlu1 %v4354_v8, %s3916_s12 }
 0xacd   : > { %2201 = vrot.lane.b32.xlu1 %v4502_v0, %s3917_s13 }
 0xad1   : > { %2173 = vrot.lane.b32.xlu1 %v4358_v10, %s3916_s12  ;;  %3755 = vrot.lane.b32.xlu0 %v4015_v24, %s3915_s10  ;;  %s278_s10 = scalar_lea.vmem %s5089_s7, %s2985_s11 }
 0xad5   : > { %2205 = vrot.lane.b32.xlu1 %v4506_v57, %s3917_s13  ;;  %2171 = vrot.lane.b32.xlu0 %v4352_v7, %s3916_s12 }
 0xad9   : > { %2177 = vrot.lane.b32.xlu1 %v4362_v13, %s3916_s12  ;;  %2203 = vrot.lane.b32.xlu0 %v4500_v38, %s3917_s13 }
 0xadd   : > { %2209 = vrot.lane.b32.xlu1 %v4510_v23, %s3917_s13  ;;  %2175 = vrot.lane.b32.xlu0 %v4356_v9, %s3916_s12 }
 0xae1   : > { %2181 = vrot.lane.b32.xlu1 %v4366_v17, %s3916_s12  ;;  %2207 = vrot.lane.b32.xlu0 %v4504_v1, %s3917_s13 }
 0xae5   : > { %2213 = vrot.lane.b32.xlu1 %v4514_v33, %s3917_s13  ;;  %2179 = vrot.lane.b32.xlu0 %v4360_v11, %s3916_s12 }
 0xae9   : > { %2211 = vrot.lane.b32.xlu0 %v4508_v20, %s3917_s13 }
 0xaed   : > { %2183 = vrot.lane.b32.xlu0 %v4364_v14, %s3916_s12 }
 0xb33   : > { %v1973_v29 = vpop.xlane.xlu0 %1972 }
 0xb34   : > { %v1970_v24 = vpop.xlane.xlu1 %1969 }
 0xb35   : > { %3881 = vrcp.f32 %v1970_v24 }
 0xb38   : > { %v1976_v34 = vpop.xlane.xlu1 %1975 }
 0xb39   : > { %3883 = vrcp.f32 %v1976_v34 }
 0xb3a   : > { %3885 = vrcp.f32 %v1973_v29 }
 0xb3c   : > { %v1979_v7 = vpop.xlane.xlu0 %1978 }
 0xb3d   : > { %v1982_v13 = vpop.xlane.xlu1 %1981  ;;  %3887 = vrcp.f32 %v1979_v7 }
 0xb3e   : > { %3889 = vrcp.f32 %v1982_v13 }
 0xb3f   : > { %v3882_v8 = vpop.eup %3881 }
 0xb40   : > { %v1985_v9 = vpop.xlane.xlu0 %1984  ;;  %v1993_v10 = vmul.f32 %v3882_v8, %v4552_v37 }
 0xb41   : > { %v3761_v0 = vpop.permute.xlu1 %3760  ;;  %3891 = vrcp.f32 %v1985_v9 }
 0xb42   : > { %3371 = vmatprep.mubr.msk.f32.mxu0 %vm614_vm3, %v1993_v10  ;;  %v3763_v57 = vunpack.i.h.bf16 %v3761_v0  ;;  %v3762_v20 = vunpack.i.l.bf16 %v3761_v0  ;;  %v2910_v0 = vld [vmem:[%s5086_s4 + $0x40] sm:$0xff] }
 0xb43   : > { %v3884_v17 = vpop.eup %3883 }
 0xb44   : > { %v1991_v11 = vpop.xlane.xlu0 %1990  ;;  %v1997_v38 = vmul.f32 %v3884_v17, %v3870_v26  ;;  %v3563_v43 = vpack.c.bf16 %v3763_v57, %v3762_v20  ;;  %v3886_v56 = vpop.eup %3885 }
 0xb45   : > { %v3766_v32 = vpop.permute.xlu1 %3765  ;;  %v1995_v19 = vmul.f32 %v3886_v56, %v4550_v62 }
 0xb46   : > { %3374 = vmatprep.mubr.msk.f32.mxu1 %vm614_vm3, %v1997_v38  ;;  %v3768_v5 = vunpack.i.h.bf16 %v3766_v32  ;;  %v3767_v54 = vunpack.i.l.bf16 %v3766_v32  ;;  %v2312_v38 = vld [vmem:[%s5086_s4] sm:$0xff] }
 0xb47   : > { %v3888_v6 = vpop.eup %3887 }
 0xb48   : > { %v1988_v14 = vpop.xlane.xlu0 %1987  ;;  %v3567_v55 = vpack.c.bf16 %v3768_v5, %v3767_v54  ;;  %v3890_v60 = vpop.eup %3889  ;;  %v1999_v36 = vmul.f32 %v3888_v6, %v4559_v30  ;;  %v2570_v30 = vld [vmem:[%s5087_s5 + $0x8] sm:$0xff]  ;;  %v2345_v5 = vmul.f32 0.0, %v2910_v0 }
 0xb49   : > { %3893 = vrcp.f32 %v1988_v14  ;;  %v2001_v22 = vmul.f32 %v3890_v60, %v4561_v35  ;;  %v3571_v35 = vpack.c.bf16 %v2570_v30, %v2569_v15  ;;  %v2911_v6 = vld [vmem:[%s5086_s4 + $0x48] sm:$0xff] }
 0xb4a   : > { %3895 = vrcp.f32 %v1991_v11 }
 0xb4b   : > { %v3892_v37 = vpop.eup %3891 }
 0xb4c   : > { %v3756_v1 = vpop.permute.xlu0 %3755  ;;  %v2003_v53 = vmul.f32 %v3892_v37, %v4567_v3  ;;  %v2170_v3 = vpop.permute.xlu1 %2169 }
 0xb4d   : > { %v3758_v23 = vunpack.i.h.bf16 %v3756_v1  ;;  %v3757_v33 = vunpack.i.l.bf16 %v3756_v1  ;;  %v2257_v11 = vsel %vm452_vm1, %v4206_v45, %v2170_v3 }
 0xb4f   : > { %v3559_v51 = vpack.c.bf16 %v3758_v23, %v3757_v33 }
 0xb50   : > { %v2172_v40 = vpop.permute.xlu0 %2171 }
 0xb51   : > { %3560 = vmatprep.subr.bf16.mxu0 %v3559_v51  ;;  %3580 = vmatprep.subr.bf16.mxu1 %v3559_v51  ;;  %v2258_v1 = vsel %vm452_vm1, %v4204_v44, %v2172_v40  ;;  %v2320_v44 = vmul.f32 0.0, %v2312_v38  ;;  %v2960_v38 = vld [vmem:[%s5086_s4 + $0x1d0] sm:$0xff] }
 0xb52   : > { %3562 = vmatpush3.bf16.msra.mxu0 %v3559_v51  ;;  %3584 = vmatpush3.bf16.msra.mxu1 %v3559_v51 }
 0xb53   : > { %3564 = vmatprep.subr.bf16.mxu0 %v3563_v43  ;;  %3581 = vmatprep.subr.bf16.mxu1 %v3563_v43  ;;  %v3894_v58 = vpop.eup %3893 }
 0xb54   : > { %v3896_v16 = vpop.eup %3895  ;;  %v2005_v52 = vmul.f32 %v3894_v58, %v4575_v42  ;;  %v2204_v41 = vpop.permute.xlu0 %2203  ;;  %v2918_v58 = vld [vmem:[%s5086_s4 + $0x80] sm:$0xff] }
 0xb55   : > { %v2007_v62 = vmul.f32 %v3896_v16, %v4571_v2  ;;  %v2202_v2 = vpop.permute.xlu1 %2201  ;;  %v2267_v20 = vsel %vm2265_vm4, %v2258_v1, %v2204_v41 }
 0xb56   : > { %3566 = vmatpush3.bf16.msra.mxu0 %v3563_v43  ;;  %3585 = vmatpush3.bf16.msra.mxu1 %v3563_v43  ;;  %v2266_v14 = vsel %vm2265_vm4, %v2257_v11, %v2202_v2 }
 0xb57   : > { %3568 = vmatprep.subr.bf16.mxu0 %v3567_v55  ;;  %3582 = vmatprep.subr.bf16.mxu1 %v3567_v55 }
 0xb58   : > { %v2176_v4 = vpop.permute.xlu0 %2175 }
 0xb59   : > { %v2174_v42 = vpop.permute.xlu1 %2173  ;;  %v2260_v23 = vsel %vm452_vm1, %v4208_v46, %v2176_v4  ;;  %v2912_v46 = vld [vmem:[%s5086_s4 + $0x50] sm:$0xff]  ;;  %v2950_v4 = vld [vmem:[%s5086_s4 + $0x180] sm:$0xff] }
 0xb5a   : > { %3570 = vmatpush3.bf16.msra.mxu0 %v3567_v55  ;;  %3586 = vmatpush3.bf16.msra.mxu1 %v3567_v55  ;;  %v2259_v57 = vsel %vm452_vm1, %v4210_v39, %v2174_v42 }
 0xb5b   : > { %3572 = vmatprep.subr.bf16.mxu1 %v3571_v35 }
 0xb5c   : > { %v2208_v29 = vpop.permute.xlu0 %2207 }
 0xb5d   : > { %3372 = vmatmul.mubr.msk.f32.vlgmr.msra.gmra.mrb[40].mxu0 %vm614_vm3, %v1995_v19  ;;  %3375 = vmatmul.mubr.msk.f32.vlgmr.msra.gmra.mrb[24].mxu1 %vm614_vm3, %v1999_v36  ;;  %v2206_v24 = vpop.permute.xlu1 %2205  ;;  %v2269_v51 = vsel %vm2265_vm4, %v2260_v23, %v2208_v29  ;;  %v2935_v19 = vld [vmem:[%s5086_s4 + $0x108] sm:$0xff] }
 0xb5e   : > { %3377 = vmatprep.mubr.msk.f32.mxu1 %vm614_vm3, %v2001_v22  ;;  %3574 = vmatpush3.bf16.msra.mxu1 %v3571_v35  ;;  %v4651_v45 = vsel %vm2265_vm4, %v2259_v57, %v2206_v24  ;;  %v2313_v22 = vld [vmem:[%s5086_s4 + $0x8] sm:$0xff] }
 0xb5f   : > { %v2927_v35 = vld [vmem:[%s5086_s4 + $0xc8] sm:$0xff] }
 0xb60   : > { %v2180_v7 = vpop.permute.xlu0 %2179 }
 0xb61   : > { %3378 = vmatmul.mubr.msk.f32.gmra.mrb[26].mxu1 %vm614_vm3, %v2003_v53  ;;  %v2178_v34 = vpop.permute.xlu1 %2177  ;;  %v2262_v55 = vsel %vm452_vm1, %v4212_v47, %v2180_v7 }
 0xb62   : > { %3380 = vmatprep.mubr.msk.f32.mxu1 %vm614_vm3, %v2005_v52  ;;  %v2261_v33 = vsel %vm452_vm1, %v4214_v48, %v2178_v34 }
 0xb64   : > { %v2212_v9 = vpop.permute.xlu0 %2211 }
 0xb65   : > { %3381 = vmatmul.mubr.msk.f32.gmra.mrb[28].mxu1 %vm614_vm3, %v2007_v62  ;;  %v2210_v8 = vpop.permute.xlu1 %2209  ;;  %v2271_v36 = vsel %vm2265_vm4, %v2262_v55, %v2212_v9 }
 0xb66   : > { %v4662_v54 = vsel %vm2265_vm4, %v2261_v33, %v2210_v8 }
 0xb68   : > { %v2184_v13 = vpop.permute.xlu0 %2183 }
 0xb69   : > { %v2182_v10 = vpop.permute.xlu1 %2181  ;;  %v4695_v62 = vsel %vm452_vm1, %v4216_v49, %v2184_v13  ;;  %v2926_v49 = vld [vmem:[%s5086_s4 + $0xc0] sm:$0xff]  ;;  %v2937_v13 = vld [vmem:[%s5086_s4 + $0x118] sm:$0xff] }
 0xb6a   : > { %v2263_v60 = vsel %vm452_vm1, %v4218_v50, %v2182_v10  ;;  %v2314_v50 = vld [vmem:[%s5086_s4 + $0x10] sm:$0xff]  ;;  %v2914_v10 = vld [vmem:[%s5086_s4 + $0x60] sm:$0xff] }
 0xb6d   : > { %v2214_v17 = vpop.permute.xlu1 %2213 }
 0xb6e   : > { %v4682_v37 = vsel %vm2265_vm4, %v2263_v60, %v2214_v17 }
 0xc30   : > { %v3373_v63 = vpop.f32.mrb[40].mxu0  ;;  %v3376_v21 = vpop.f32.mrb[24].mxu1 }
 0xc31   : > { %v2132_v25 = vpop.f32.mrb[25].mxu1  ;;  %2235 = vrot.lane.b32.xlu0 %v3373_v63, %s3918_s14  ;;  %v2122_v18 = vpop.f32.mrb[41].mxu0  ;;  %v2958_v63 = vld [vmem:[%s5086_s4 + $0x1c0] sm:$0xff] }
 0xc32   : > { %2233 = vrot.lane.b32.xlu1 %v2122_v18, %s3918_s14  ;;  %v2919_v18 = vld [vmem:[%s5086_s4 + $0x88] sm:$0xff] }
 0xc34   : > { %v3379_v26 = vpop.f32.mrb[26].mxu1 }
 0xc35   : > { %v2142_v31 = vpop.f32.mrb[27].mxu1  ;;  %2239 = vrot.lane.b32.xlu0 %v3376_v21, %s3918_s14 }
 0xc36   : > { %2237 = vrot.lane.b32.xlu1 %v2132_v25, %s3918_s14  ;;  %v2353_v25 = vadd.f32 %v2345_v5, %v2320_v44  ;;  %v2315_v44 = vld [vmem:[%s5086_s4 + $0x18] sm:$0xff] }
 0xc37   : > { %v2913_v5 = vld [vmem:[%s5086_s4 + $0x58] sm:$0xff] }
 0xc38   : > { %v3382_v61 = vpop.f32.mrb[28].mxu1 }
 0xc39   : > { %v2152_v59 = vpop.f32.mrb[29].mxu1  ;;  %2243 = vrot.lane.b32.xlu0 %v3379_v26, %s3918_s14  ;;  %v2934_v26 = vld [vmem:[%s5086_s4 + $0x100] sm:$0xff] }
 0xc3a   : > { %2241 = vrot.lane.b32.xlu1 %v2142_v31, %s3918_s14 }
 0xc3d   : > { %2215 = vrot.lane.b32.xlu0 %v4512_v28, %s3917_s13  ;;  %v3575_v28 = vpack.c.bf16 %v2572_v12, %v2571_v27  ;;  %v2942_v27 = vld [vmem:[%s5086_s4 + $0x140] sm:$0xff] }
 0xc3e   : > { %2245 = vrot.lane.b32.xlu1 %v2152_v59, %s3918_s14 }
 0xc3f   : > { %3576 = vmatprep.subr.bf16.mxu1 %v3575_v28 }
 0xc40   : > { %3578 = vmatpush3.bf16.msra.mxu1 %v3575_v28 }
 0xc42   : > { %2247 = vrot.lane.b32.xlu1 %v3382_v61, %s3918_s14 }
 0xca3   : > { %v2236_v32 = vpop.permute.xlu0 %2235 }
 0xca4   : > { %v4659_v43 = vsel %vm2274_vm5, %v2267_v20, %v2236_v32  ;;  %v2234_v39 = vpop.permute.xlu1 %2233 }
 0xca5   : > { %v2292_v48 = vrot.slane %v4659_v43, 7  ;;  %v2364_v56 = vrot.slane %v4659_v43, 1  ;;  %v2275_v47 = vsel %vm2274_vm5, %v2266_v14, %v2234_v39  ;;  %v2347_v21 = vmul.f32 %v2912_v46, %v4659_v43  ;;  %v2936_v39 = vld [vmem:[%s5086_s4 + $0x110] sm:$0xff] }
 0xca6   : > { %v2291_v53 = vrot.slane %v2275_v47, 7  ;;  %v2363_v16 = vrot.slane %v2275_v47, 1  ;;  %v2346_v31 = vmul.f32 %v2911_v6, %v2275_v47  ;;  %v2450_v41 = vmul.f32 %v2935_v19, %v4659_v43  ;;  %v2316_v19 = vld [vmem:[%s5086_s4 + $0x20] sm:$0xff] }
 0xca7   : > { %v2240_v52 = vpop.permute.xlu0 %2239  ;;  %v4729_v42 = vmul.f32 %v2958_v63, %v4659_v43  ;;  %v2449_v29 = vmul.f32 %v2934_v26, %v2275_v47  ;;  %v2920_v47 = vld [vmem:[%s5086_s4 + $0x90] sm:$0xff]  ;;  %v2929_v26 = vld [vmem:[%s5086_s4 + $0xd8] sm:$0xff] }
 0xca8   : > { %v2293_v61 = vsel %vm2290_vm6, %v2291_v53, %v2292_v48  ;;  %v2311_v59 = vsel %vm2290_vm6, 0.0, %v2291_v53  ;;  %v2365_v15 = vsel %vm2362_vm7, %v2363_v16, %v2364_v56  ;;  %v2386_v30 = vsel %vm2362_vm7, 0.0, %v2363_v16  ;;  %v2238_v2 = vpop.permute.xlu1 %2237  ;;  %v2921_v53 = vld [vmem:[%s5086_s4 + $0x98] sm:$0xff]  ;;  %v2943_v16 = vld [vmem:[%s5086_s4 + $0x148] sm:$0xff]  ;;  %v2944_v43 = vld [vmem:[%s5086_s4 + $0x150] sm:$0xff] }
 0xca9   : > { %v2321_v12 = vmul.f32 %v2313_v22, %v2311_v59  ;;  %v2322_v28 = vmul.f32 %v2314_v50, %v2293_v61  ;;  %v2396_v3 = vmul.f32 %v2918_v58, %v2386_v30  ;;  %v4725_v40 = vsel %vm2274_vm5, %v2269_v51, %v2240_v52  ;;  %v2959_v22 = vld [vmem:[%s5086_s4 + $0x1c8] sm:$0xff] }
 0xcaa   : > { %v2397_v24 = vmul.f32 %v2919_v18, %v2365_v15  ;;  %v2424_v9 = vmul.f32 %v2926_v49, %v2311_v59  ;;  %v2425_v17 = vmul.f32 %v2927_v35, %v2293_v61  ;;  %v2476_v11 = vmul.f32 %v2942_v27, %v2365_v15  ;;  %v2951_v49 = vld [vmem:[%s5086_s4 + $0x188] sm:$0xff] }
 0xcab   : > { %v2354_v34 = vadd.f32 %v2346_v31, %v2321_v12  ;;  %v2355_v7 = vadd.f32 %v2347_v21, %v2322_v28  ;;  %v2404_v8 = vadd.f32 %v2396_v3, %v2353_v25  ;;  %v2296_v0 = vrot.slane %v4725_v40, 7  ;;  %v2244_v1 = vpop.permute.xlu0 %2243  ;;  %v2916_v3 = vld [vmem:[%s5086_s4 + $0x70] sm:$0xff] }
 0xcac   : > { %v2368_v14 = vrot.slane %v4725_v40, 1  ;;  %v4745_v23 = vmul.f32 %v2950_v4, %v2293_v61  ;;  %v2277_v33 = vsel %vm2274_vm5, %v4651_v45, %v2238_v2  ;;  %v2349_v32 = vmul.f32 %v2914_v10, %v4725_v40  ;;  %v2242_v58 = vpop.permute.xlu1 %2241  ;;  %v2967_v61 = vld [vmem:[%s5086_s4 + $0x208] sm:$0xff] }
 0xcad   : > { %v2405_v57 = vadd.f32 %v2397_v24, %v2354_v34  ;;  %v2432_v20 = vadd.f32 %v2424_v9, %v2404_v8  ;;  %v4751_v51 = vmul.f32 %v2937_v13, %v4725_v40  ;;  %v2294_v55 = vrot.slane %v2277_v33, 7  ;;  %v2939_v13 = vld [vmem:[%s5086_s4 + $0x128] sm:$0xff] }
 0xcae   : > { %v2366_v46 = vrot.slane %v2277_v33, 1  ;;  %v4763_v60 = vmul.f32 %v2960_v38, %v4725_v40  ;;  %v4775_v50 = vsel %vm2274_vm5, %v2271_v36, %v2244_v1  ;;  %v2348_v31 = vmul.f32 %v2913_v5, %v2277_v33  ;;  %v2317_v5 = vld [vmem:[%s5086_s4 + $0x28] sm:$0xff] }
 0xcaf   : > { %v2433_v45 = vadd.f32 %v2425_v17, %v2405_v57  ;;  %v2457_v6 = vadd.f32 %v2449_v29, %v2432_v20  ;;  %v2295_v52 = vsel %vm2290_vm6, %v2292_v48, %v2294_v55  ;;  %v4789_v63 = vsel %vm2290_vm6, %v2294_v55, %v2296_v0  ;;  %v2928_v48 = vld [vmem:[%s5086_s4 + $0xd0] sm:$0xff]  ;;  %v2915_v17 = vld [vmem:[%s5086_s4 + $0x68] sm:$0xff] }
 0xcb0   : > { %v4794_v36 = vsel %vm2362_vm7, %v2364_v56, %v2366_v46  ;;  %v2369_v21 = vsel %vm2362_vm7, %v2366_v46, %v2368_v14  ;;  %v2323_v56 = vmul.f32 %v2315_v44, %v2295_v52  ;;  %v2324_v59 = vmul.f32 %v2316_v19, %v4789_v63 }
 0xcb1   : > { %v2458_v25 = vadd.f32 %v2450_v41, %v2433_v45  ;;  %v4799_v18 = vadd.f32 %v2476_v11, %v2457_v6  ;;  %v2398_v15 = vmul.f32 %v2920_v47, %v4794_v36  ;;  %v2451_v30 = vmul.f32 %v2936_v39, %v2277_v33  ;;  %v2246_v11 = vpop.permute.xlu1 %2245  ;;  %v2318_v39 = vld [vmem:[%s5086_s4 + $0x30] sm:$0xff]  ;;  %v2922_v45 = vld [vmem:[%s5086_s4 + $0xa0] sm:$0xff]  ;;  %v2216_v47 = vpop.permute.xlu0 %2215 }
 0xcb2   : > { %v2529_v35 = vmul.f32 %v2959_v22, %v2277_v33  ;;  %v2356_v27 = vadd.f32 %v2348_v31, %v2323_v56  ;;  %v2399_v12 = vmul.f32 %v2921_v53, %v2369_v21  ;;  %v2477_v28 = vmul.f32 %v2943_v16, %v4794_v36  ;;  %v2931_v31 = vld [vmem:[%s5086_s4 + $0xe8] sm:$0xff] }
 0xcb3   : > { %v2300_v2 = vrot.slane %v4775_v50, 7  ;;  %v2406_v41 = vadd.f32 %v2398_v15, %v2355_v7  ;;  %v2426_v4 = vmul.f32 %v2928_v48, %v2295_v52  ;;  %v2427_v24 = vmul.f32 %v2929_v26, %v4789_v63  ;;  %v2961_v48 = vld [vmem:[%s5086_s4 + $0x1d8] sm:$0xff] }
 0xcb4   : > { %v2478_v29 = vmul.f32 %v2944_v43, %v2369_v21  ;;  %v2407_v34 = vadd.f32 %v2399_v12, %v2356_v27  ;;  %v2485_v8 = vadd.f32 %v2477_v28, %v2458_v25  ;;  %v2504_v9 = vmul.f32 %v2951_v49, %v2295_v52  ;;  %v2930_v25 = vld [vmem:[%s5086_s4 + $0xe0] sm:$0xff] }
 0xcb5   : > { %v2554_v10 = vmul.f32 %v2967_v61, %v2369_v21  ;;  %v2434_v38 = vadd.f32 %v2426_v4, %v2406_v41  ;;  %v2351_v7 = vmul.f32 %v2916_v3, %v4775_v50  ;;  %v2357_v1 = vadd.f32 %v2349_v32, %v2324_v59  ;;  %v2248_v59 = vpop.permute.xlu1 %2247  ;;  %v2924_v41 = vld [vmem:[%s5086_s4 + $0xb0] sm:$0xff] }
 0xcb6   : > { %v4833_v57 = vsel %vm2274_vm5, %v4662_v54, %v2242_v58  ;;  %v4835_v20 = vadd.f32 %v2427_v24, %v2407_v34  ;;  %v2512_v33 = vadd.f32 %v2504_v9, %v2485_v8  ;;  %v2372_v44 = vrot.slane %v4775_v50, 1  ;;  %v2962_v54 = vld [vmem:[%s5086_s4 + $0x1e0] sm:$0xff]  ;;  %v2940_v34 = vld [vmem:[%s5086_s4 + $0x130] sm:$0xff] }
 0xcb7   : > { %v2298_v55 = vrot.slane %v4833_v57, 7  ;;  %v2459_v32 = vadd.f32 %v2451_v30, %v2434_v38  ;;  %v4849_v46 = vmul.f32 %v2939_v13, %v4775_v50  ;;  %v2350_v6 = vmul.f32 %v2915_v17, %v4833_v57  ;;  %v2938_v58 = vld [vmem:[%s5086_s4 + $0x120] sm:$0xff]  ;;  %v2917_v30 = vld [vmem:[%s5086_s4 + $0x78] sm:$0xff]  ;;  %v2947_v17 = vld [vmem:[%s5086_s4 + $0x168] sm:$0xff] }
 0xcb8   : > { %v2370_v19 = vrot.slane %v4833_v57, 1  ;;  %v2537_v22 = vadd.f32 %v2529_v35, %v2512_v33  ;;  %v4869_v52 = vsel %vm2274_vm5, %v4682_v37, %v2246_v11  ;;  %v4891_v56 = vmul.f32 %v2962_v54, %v4775_v50  ;;  %v2964_v33 = vld [vmem:[%s5086_s4 + $0x1f0] sm:$0xff]  ;;  %v2957_v50 = vld [vmem:[%s5086_s4 + $0x1b8] sm:$0xff] }
 0xcb9   : > { %v4862_v53 = vsel %vm2290_vm6, %v2296_v0, %v2298_v55  ;;  %v4865_v16 = vsel %vm2290_vm6, %v2298_v55, %v2300_v2  ;;  %v4871_v21 = vadd.f32 %v2478_v29, %v2459_v32  ;;  %v2273_v61 = vsel %vm2265_vm4, %v4695_v62, %v2216_v47  ;;  %v2945_v62 = vld [vmem:[%s5086_s4 + $0x158] sm:$0xff]  ;;  %v2932_v29 = vld [vmem:[%s5086_s4 + $0xf0] sm:$0xff] }
 0xcba   : > { %v2325_v0 = vmul.f32 %v2317_v5, %v4862_v53  ;;  %v2326_v26 = vmul.f32 %v2318_v39, %v4865_v16  ;;  %v4886_v37 = vsel %vm2362_vm7, %v2368_v14, %v2370_v19  ;;  %v4888_v43 = vadd.f32 %v2554_v10, %v2537_v22  ;;  %v2319_v14 = vld [vmem:[%s5086_s4 + $0x38] sm:$0xff]  ;;  %v2948_v47 = vld [vmem:[%s5086_s4 + $0x170] sm:$0xff] }
 0xcbb   : > { %v2400_v49 = vmul.f32 %v2922_v45, %v4886_v37  ;;  %v2453_v40 = vmul.f32 %v2938_v58, %v4833_v57  ;;  %v2302_v27 = vrot.slane %v4869_v52, 7  ;;  %v2428_v28 = vmul.f32 %v2930_v25, %v4862_v53  ;;  %v2949_v22 = vld [vmem:[%s5086_s4 + $0x178] sm:$0xff] }
 0xcbc   : > { %v4899_v15 = vadd.f32 %v2350_v6, %v2325_v0  ;;  %v2359_v35 = vadd.f32 %v2351_v7, %v2326_v26  ;;  %v4914_v3 = vmul.f32 %v2961_v48, %v4833_v57  ;;  %v2374_v4 = vrot.slane %v4869_v52, 1  ;;  %v2933_v6 = vld [vmem:[%s5086_s4 + $0xf8] sm:$0xff]  ;;  %v2966_v26 = vld [vmem:[%s5086_s4 + $0x200] sm:$0xff] }
 0xcbd   : > { %v2408_v12 = vadd.f32 %v2400_v49, %v2357_v1  ;;  %v4921_v24 = vmul.f32 %v2931_v31, %v4865_v16  ;;  %v4930_v8 = vsel %vm2290_vm6, %v2300_v2, %v2302_v27  ;;  %v2282_v9 = vsel %vm2274_vm5, %v2273_v61, %v2248_v59  ;;  %v2956_v49 = vld [vmem:[%s5086_s4 + $0x1b0] sm:$0xff] }
 0xcbe   : > { %v2511_v10 = vadd.f32 %v4745_v23, %v4799_v18  ;;  %v2327_v11 = vmul.f32 %v2319_v14, %v4930_v8  ;;  %v2352_v38 = vmul.f32 %v2917_v30, %v4869_v52  ;;  %v4943_v7 = vsel %vm2362_vm7, %v2372_v44, %v2374_v4  ;;  %v2925_v23 = vld [vmem:[%s5086_s4 + $0xb8] sm:$0xff]  ;;  %v2952_v14 = vld [vmem:[%s5086_s4 + $0x190] sm:$0xff] }
 0xcbf   : > { %v2436_v13 = vadd.f32 %v2428_v28, %v2408_v12  ;;  %v2479_v2 = vmul.f32 %v2945_v62, %v4886_v37  ;;  %v2402_v1 = vmul.f32 %v2924_v41, %v4943_v7  ;;  %v2941_v18 = vld [vmem:[%s5086_s4 + $0x138] sm:$0xff]  ;;  %v2376_v5 = vrot.slane %v2282_v9, 1  ;;  %v2923_v12 = vld [vmem:[%s5086_s4 + $0xa8] sm:$0xff] }
 0xcc0   : > { %v2412_v39 = vrot.slane %v2282_v9, 7  ;;  %v2360_v32 = vadd.f32 %v2352_v38, %v2327_v11  ;;  %v2430_v54 = vmul.f32 %v2932_v29, %v4930_v8  ;;  %v2455_v45 = vmul.f32 %v2940_v34, %v4869_v52  ;;  %v2968_v34 = vld [vmem:[%s5086_s4 + $0x210] sm:$0xff] }
 0xcc1   : > { %v2461_v55 = vadd.f32 %v2453_v40, %v2436_v13  ;;  %v2410_v58 = vadd.f32 %v2402_v1, %v2359_v35  ;;  %v4968_v25 = vsel %vm2362_vm7, %v2374_v4, %v2376_v5  ;;  %v2466_v0 = vsel %vm2362_vm7, %v2376_v5, 0.0 }
 0xcc2   : > { %v2413_v48 = vsel %vm2290_vm6, %v2302_v27, %v2412_v39  ;;  %v4976_v31 = vmul.f32 %v2947_v17, %v4943_v7  ;;  %v2403_v61 = vmul.f32 %v2925_v23, %v4968_v25  ;;  %v2456_v59 = vmul.f32 %v2941_v18, %v2282_v9 }
 0xcc3   : > { %v2534_v40 = vmul.f32 %v2964_v33, %v2282_v9  ;;  %v2438_v30 = vadd.f32 %v2430_v54, %v2410_v58  ;;  %v2431_v35 = vmul.f32 %v2933_v6, %v2413_v48  ;;  %v2482_v27 = vmul.f32 %v2948_v47, %v4968_v25  ;;  %v2946_v9 = vld [vmem:[%s5086_s4 + $0x160] sm:$0xff]  ;;  %v2972_v33 = vld [vmem:[%s5086_s4 + $0x230] sm:$0xff] }
 0xcc4   : > { %v2483_v62 = vmul.f32 %v2949_v22, %v2466_v0  ;;  %v2411_v28 = vadd.f32 %v2403_v61, %v2360_v32  ;;  %v2493_v41 = vsel %vm2290_vm6, %v2412_v39, 0.0  ;;  %v2536_v4 = vadd.f32 %v4729_v42, %v2511_v10 }
 0xcc5   : > { %v2553_v29 = vmul.f32 %v2966_v26, %v4794_v36  ;;  %v2463_v13 = vadd.f32 %v2455_v45, %v2438_v30  ;;  %v2509_v17 = vmul.f32 %v2956_v49, %v2413_v48  ;;  %v2505_v11 = vmul.f32 %v2952_v14, %v4789_v63  ;;  %v2953_v36 = vld [vmem:[%s5086_s4 + $0x198] sm:$0xff]  ;;  %v2954_v63 = vld [vmem:[%s5086_s4 + $0x1a0] sm:$0xff]  ;;  %v2955_v48 = vld [vmem:[%s5086_s4 + $0x1a8] sm:$0xff] }
 0xcc6   : > { %v2373_v42 = vsel %vm2362_vm7, %v2370_v19, %v2372_v44  ;;  %v2439_v10 = vadd.f32 %v2431_v35, %v2411_v28  ;;  %v2460_v23 = vadd.f32 %v4751_v51, %v4835_v20  ;;  %v2555_v19 = vmul.f32 %v2968_v34, %v4886_v37  ;;  %v2969_v37 = vld [vmem:[%s5086_s4 + $0x218] sm:$0xff] }
 0xcc7   : > { %v2561_v38 = vadd.f32 %v2553_v29, %v2536_v4  ;;  %v2401_v1 = vmul.f32 %v2923_v12, %v2373_v42  ;;  %v2490_v57 = vadd.f32 %v2482_v27, %v2463_v13  ;;  %v2513_v44 = vadd.f32 %v2505_v11, %v4871_v21 }
 0xcc8   : > { %v2480_v18 = vmul.f32 %v2946_v9, %v2373_v42  ;;  %v2464_v5 = vadd.f32 %v2456_v59, %v2439_v10  ;;  %v2487_v20 = vadd.f32 %v2479_v2, %v2460_v23  ;;  %v2506_v39 = vmul.f32 %v2953_v36, %v4862_v53  ;;  %v2970_v53 = vld [vmem:[%s5086_s4 + $0x220] sm:$0xff] }
 0xcc9   : > { %3391 = vmatprep.mubr.msk.f32.mxu1 %vm298_vm0, %v2561_v38  ;;  %v2409_v51 = vadd.f32 %v2401_v1, %v4899_v15  ;;  %v2517_v32 = vadd.f32 %v2509_v17, %v2490_v57  ;;  %v2538_v21 = vadd.f32 %v4763_v60, %v2513_v44  ;;  %v2507_v45 = vmul.f32 %v2954_v63, %v4865_v16  ;;  %v2965_v16 = vld [vmem:[%s5086_s4 + $0x1f8] sm:$0xff] }
 0xcca   : > { %3392 = vmatmul.mubr.msk.f32.vlgmr.msra.gmra.mrb[30].mxu1 %vm298_vm0, %v4888_v43  ;;  %v2488_v54 = vadd.f32 %v2480_v18, %v2461_v55  ;;  %v2491_v6 = vadd.f32 %v2483_v62, %v2464_v5  ;;  %v2510_v47 = vmul.f32 %v2957_v50, %v2493_v41  ;;  %v2514_v22 = vadd.f32 %v2506_v39, %v2487_v20  ;;  %v2973_v62 = vld [vmem:[%s5086_s4 + $0x238] sm:$0xff] }
 0xccb   : > { %v2437_v15 = vadd.f32 %v4921_v24, %v2409_v51  ;;  %v2542_v2 = vadd.f32 %v2534_v40, %v2517_v32  ;;  %v2559_v43 = vmul.f32 %v2972_v33, %v2466_v0  ;;  %v2563_v58 = vadd.f32 %v2555_v19, %v2538_v21  ;;  %v2963_v24 = vld [vmem:[%s5086_s4 + $0x1e8] sm:$0xff] }
 0xccc   : > { %v2515_v60 = vadd.f32 %v2507_v45, %v2488_v54  ;;  %v2518_v55 = vadd.f32 %v2510_v47, %v2491_v6  ;;  %v2539_v26 = vadd.f32 %v4914_v3, %v2514_v22  ;;  %v2556_v49 = vmul.f32 %v2969_v37, %v2373_v42 }
 0xccd   : > { %v2462_v61 = vadd.f32 %v4849_v46, %v2437_v15  ;;  %3394 = vmatprep.mubr.msk.f32.mxu1 %vm298_vm0, %v2563_v58  ;;  %v2557_v59 = vmul.f32 %v2970_v53, %v4943_v7  ;;  %v2567_v40 = vadd.f32 %v2559_v43, %v2542_v2  ;;  %v2508_v35 = vmul.f32 %v2955_v48, %v4930_v8  ;;  %v2971_v46 = vld [vmem:[%s5086_s4 + $0x228] sm:$0xff] }
 0xcce   : > { %v2540_v0 = vadd.f32 %v4891_v56, %v2515_v60  ;;  %v2564_v14 = vadd.f32 %v2556_v49, %v2539_v26  ;;  %v2535_v3 = vmul.f32 0.0, %v2965_v16  ;;  %v2533_v56 = vmul.f32 %v2963_v24, %v4869_v52  ;;  %v2974_v52 = vld [vmem:[%s5088_s6] ss:$0 sm:$0xff] }
 0xccf   : > { %v2489_v30 = vadd.f32 %v4976_v31, %v2462_v61  ;;  %v2558_v8 = vmul.f32 %v2971_v46, %v4968_v25  ;;  %v2560_v28 = vmul.f32 0.0, %v2973_v62 }
 0xcd0   : > { %v2565_v27 = vadd.f32 %v2557_v59, %v2540_v0  ;;  %3395 = vmatmul.mubr.msk.f32.gmra.mrb[32].mxu1 %vm298_vm0, %v2564_v14  ;;  %v2543_v12 = vadd.f32 %v2535_v3, %v2518_v55 }
 0xcd1   : > { %v2516_v7 = vadd.f32 %v2508_v35, %v2489_v30 }
 0xcd2   : > { %3397 = vmatprep.mubr.msk.f32.mxu1 %vm298_vm0, %v2565_v27  ;;  %v2568_v4 = vadd.f32 %v2560_v28, %v2543_v12 }
 0xcd3   : > { %v2541_v31 = vadd.f32 %v2533_v56, %v2516_v7 }
 0xcd5   : > { %v2566_v41 = vadd.f32 %v2558_v8, %v2541_v31 }
 0xcd7   : > { %3398 = vmatmul.mubr.msk.f32.gmra.mrb[34].mxu1 %vm298_vm0, %v2566_v41 }
 0xcd8   : > { %3400 = vmatprep.mubr.msk.f32.mxu1 %vm298_vm0, %v2567_v40 }
 0xcdb   : > { %3401 = vmatmul.mubr.msk.f32.gmra.mrb[36].mxu1 %vm298_vm0, %v2568_v4 }
 0xd9d   : > { %v3393_v25 = vpop.f32.mrb[30].mxu1 }
 0xd9e   : > { %v2676_v29 = vadd.f32 %v3393_v25, %v2974_v52  ;;  %v2670_v34 = vpop.f32.mrb[31].mxu1 }
 0xd9f   : > { %v2671_v9 = vadd.f32 %v2974_v52, %v2670_v34 }
 0xda0   : > { %2710 = vst.msk [vmem:[%s278_s10 + $0x8] sm:$0xff] %vm298_vm0, %v2676_v29 }
 0xda1   : > { %2709 = vst.msk [vmem:[%s278_s10] sm:$0xff] %vm298_vm0, %v2671_v9 }
 0xda3   : > { %v3396_v13 = vpop.f32.mrb[32].mxu1 }
 0xda4   : > { %v2686_v17 = vadd.f32 %v3396_v13, %v2974_v52  ;;  %v2680_v11 = vpop.f32.mrb[33].mxu1 }
 0xda5   : > { %v2681_v42 = vadd.f32 %v2974_v52, %v2680_v11 }
 0xda6   : > { %2712 = vst.msk [vmem:[%s278_s10 + $0x18] sm:$0xff] %vm298_vm0, %v2686_v17 }
 0xda7   : > { %2711 = vst.msk [vmem:[%s278_s10 + $0x10] sm:$0xff] %vm298_vm0, %v2681_v42 }
 0xdaa   : > { %v3399_v36 = vpop.f32.mrb[34].mxu1 }
 0xdab   : > { %v2696_v10 = vadd.f32 %v3399_v36, %v2974_v52  ;;  %v2690_v38 = vpop.f32.mrb[35].mxu1 }
 0xdac   : > { %v2691_v1 = vadd.f32 %v2974_v52, %v2690_v38 }
 0xdad   : > { %2714 = vst.msk [vmem:[%s278_s10 + $0x28] sm:$0xff] %vm298_vm0, %v2696_v10 }
 0xdae   : > { %2713 = vst.msk [vmem:[%s278_s10 + $0x20] sm:$0xff] %vm298_vm0, %v2691_v1  ;;  %v3402_v23 = vpop.f32.mrb[36].mxu1 }
 0xdaf   : > { %v2706_v63 = vadd.f32 %v3402_v23, %v2974_v52  ;;  %v2700_v50 = vpop.f32.mrb[37].mxu1 }
 0xdb0   : > { %v2701_v57 = vadd.f32 %v2974_v52, %v2700_v50 }
 0xdb1   : > { %2716 = vst.msk [vmem:[%s278_s10 + $0x38] sm:$0xff] %vm298_vm0, %v2706_v63 }
 0xdb2   : > { %2715 = vst.msk [vmem:[%s278_s10 + $0x30] sm:$0xff] %vm298_vm0, %v2701_v57 }
 0xdb3 PF: > { %s17_s24 = sadd.s32 1, %s3903_s24  }
 0xdb4   : > { %p14_p4 = scmp.ge.s32.totalorder %s17_s24, 4  }
 0xdb6   :  { %16 = sbr.rel (!%p14_p4) target bundleno = 1 (0x1), region = 89 }

</bundles_post_ra>
